<compile_context>
chip_gen: v7x
topology: tpu7x:2x2x1
jax: 0.10.0
libtpu: 0.0.40
codegen_flags: <defaults>
</compile_context>

<pallas_src>
import jax
import jax.numpy as jnp
from jax.experimental import pallas as pl
from jax.experimental.pallas import tpu as pltpu

IN_DIM = 784
H1_DIM = 512
H2_DIM = 300
OUT_DIM = 20

# Lane-dense padded dims (multiples of 128).
H2_PAD = 384
OUT_PAD = 128

TILE_B = 1024                      # max batch rows per grid step
VMEM_LIMIT_BYTES = 48 * 1024 * 1024  # fits v5e/v6e/v7x physical VMEM with headroom


def _round_up(n, m):
    return (n + m - 1) // m * m


def _mlp_kernel(x_ref, w1_ref, b1_ref, w2_ref, b2_ref, w3_ref, b3_ref, o_ref):
    # x arrives f32; bf16 pack happens here (VPU work, hidden under the MXU).
    x = x_ref[...].astype(jnp.bfloat16)

    # Layer 1: Linear(784 -> 512) + ReLU.  bf16 operands, f32 MXU accumulate.
    h1 = jnp.dot(x, w1_ref[...], preferred_element_type=jnp.float32)
    h1 = jnp.maximum(h1 + b1_ref[...], 0.0)

    # Layer 2: Linear(512 -> 384[=300 padded]) + Sigmoid.
    h2 = jnp.dot(h1.astype(jnp.bfloat16), w2_ref[...],
                 preferred_element_type=jnp.float32)
    h2 = jax.nn.sigmoid(h2 + b2_ref[...])

    # Layer 3: Linear(384 -> 128[=20 padded]).  Padded w3 rows are exactly zero
    # so the sigmoid(0)=0.5 padding lanes of h2 contribute nothing.
    out = jnp.dot(h2.astype(jnp.bfloat16), w3_ref[...],
                  preferred_element_type=jnp.float32)
    o_ref[...] = (out + b3_ref[...]).astype(o_ref.dtype)


def prepare_params(params):
    """One-time pad/cast of parameters into the kernel layout.

    Call once and reuse across forward calls; doing this per call re-streams
    ~3.3 MB of f32 weights through HBM for nothing.  Weights are stored as
    (in, out) so the kernel computes x @ W + b.  Invariant: the padded rows of
    w3 (rows 300..383) must stay exactly zero so the sigmoid(0)=0.5 pad lanes
    of h2 contribute nothing.
    """
    w1 = params["w1"].astype(jnp.bfloat16)                               # (784, 512)
    b1 = params["b1"].reshape(1, H1_DIM).astype(jnp.float32)             # (1, 512)
    w2 = jnp.pad(params["w2"],
                 ((0, 0), (0, H2_PAD - H2_DIM))).astype(jnp.bfloat16)    # (512, 384)
    b2 = jnp.pad(params["b2"].reshape(1, H2_DIM),
                 ((0, 0), (0, H2_PAD - H2_DIM))).astype(jnp.float32)     # (1, 384)
    w3 = jnp.pad(params["w3"],
                 ((0, H2_PAD - H2_DIM),
                  (0, OUT_PAD - OUT_DIM))).astype(jnp.bfloat16)          # (384, 128)
    b3 = jnp.pad(params["b3"].reshape(1, OUT_DIM),
                 ((0, 0), (0, OUT_PAD - OUT_DIM))).astype(jnp.float32)   # (1, 128)
    return {"w1": w1, "b1": b1, "w2": w2, "b2": b2, "w3": w3, "b3": b3}


@jax.jit
def sequential_model_1(x, prepared):
    """Forward pass matching the PyTorch module.

    x: any f32 array whose trailing dims flatten to 784 (e.g. (B, 1, 28, 28)).
    prepared: output of prepare_params() (padded bf16 weights, f32 biases).
    """
    if x.ndim > 1:
        x = x.reshape(x.shape[0], -1)  # nn.Flatten(): keep batch dim
    B = x.shape[0]
    assert x.shape[1] == IN_DIM

    # ---- batch tiling (all static shape math under jit) ----
    b_pad8 = _round_up(B, 8)
    n_tiles = pl.cdiv(b_pad8, TILE_B)
    if b_pad8 >= 16:
        # >= 2 (and even) grid steps so the "parallel" axis shards evenly
        # across both v7x TensorCores instead of idling one.
        n_tiles = max(n_tiles, 2)
        n_tiles += n_tiles % 2
    tile_b = _round_up(pl.cdiv(b_pad8, n_tiles), 8)
    b_pad = tile_b * n_tiles        # pads at most a handful of rows, not a tile
    if b_pad != B:
        x = jnp.pad(x, ((0, b_pad - B), (0, 0)))

    def _const_spec(shape):
        # Same block every grid step -> DMA'd once, stays VMEM-resident.
        return pl.BlockSpec(shape, lambda i: (0, 0))

    out = pl.pallas_call(
        _mlp_kernel,
        out_shape=jax.ShapeDtypeStruct((b_pad, OUT_PAD), jnp.float32),
        grid=(n_tiles,),
        in_specs=[
            pl.BlockSpec((tile_b, IN_DIM), lambda i: (i, 0)),  # x tile (f32)
            _const_spec((IN_DIM, H1_DIM)),                     # w1
            _const_spec((1, H1_DIM)),                          # b1
            _const_spec((H1_DIM, H2_PAD)),                     # w2
            _const_spec((1, H2_PAD)),                          # b2
            _const_spec((H2_PAD, OUT_PAD)),                    # w3
            _const_spec((1, OUT_PAD)),                         # b3
        ],
        out_specs=pl.BlockSpec((tile_b, OUT_PAD), lambda i: (i, 0)),
        compiler_params=pltpu.CompilerParams(
            dimension_semantics=("parallel",),   # megacore sharding on v7x
            vmem_limit_bytes=VMEM_LIMIT_BYTES,
        ),
    )(x, prepared["w1"], prepared["b1"], prepared["w2"], prepared["b2"],
      prepared["w3"], prepared["b3"])

    # Module semantics: f32 logits of shape (B, 20).  A consumer that tolerates
    # the padded (b_pad, 128) buffer can skip this slice and save an HBM pass.
    return out[:B, :OUT_DIM]


def init_params(key):
    """Deterministic parameter init (uniform ~ PyTorch default fan-in scaling).

    PyTorch Linear stores weight as (out, in); we store the transpose (in, out)
    so the kernel computes x @ W + b.
    """
    ks = jax.random.split(key, 6)

    def linear(kw, kb, fan_in, fan_out):
        bound = 1.0 / jnp.sqrt(fan_in)
        w = jax.random.uniform(kw, (fan_in, fan_out), jnp.float32, -bound, bound)
        b = jax.random.uniform(kb, (1, fan_out), jnp.float32, -bound, bound)
        return w, b

    w1, b1 = linear(ks[0], ks[1], IN_DIM, H1_DIM)
    w2, b2 = linear(ks[2], ks[3], H1_DIM, H2_DIM)
    w3, b3 = linear(ks[4], ks[5], H2_DIM, OUT_DIM)
    return {"w1": w1, "b1": b1, "w2": w2, "b2": b2, "w3": w3, "b3": b3}


if __name__ == "__main__":
    key = jax.random.PRNGKey(0)
    k_params, k_x = jax.random.split(key)

    params = init_params(k_params)
    prepared = prepare_params(params)   # one-time pad/cast, hoisted out of the call
    # MNIST-like NCHW input: (batch=8, channels=1, 28, 28) -> flattens to 784.
    x = jax.random.normal(k_x, (8, 1, 28, 28), dtype=jnp.float32)

    logits = sequential_model_1(x, prepared)
    jax.block_until_ready(logits)
    assert logits.shape == (8, OUT_DIM), logits.shape

    # Reference in plain JAX mirroring the kernel's bf16-operand / f32-accumulate
    # numerics.  Note: bf16 quantization of x/h1/h2/weights means the kernel
    # matches a pure-f32 reference only to ~1e-2.
    xf = x.reshape(x.shape[0], -1).astype(jnp.bfloat16)
    w1b = params["w1"].astype(jnp.bfloat16)
    w2b = params["w2"].astype(jnp.bfloat16)
    w3b = params["w3"].astype(jnp.bfloat16)
    h = jnp.maximum(
        jnp.dot(xf, w1b, preferred_element_type=jnp.float32) + params["b1"], 0.0)
    h = jax.nn.sigmoid(
        jnp.dot(h.astype(jnp.bfloat16), w2b, preferred_element_type=jnp.float32)
        + params["b2"])
    ref = (jnp.dot(h.astype(jnp.bfloat16), w3b, preferred_element_type=jnp.float32)
           + params["b3"])
    assert jnp.allclose(logits, ref, atol=2e-2, rtol=2e-2), (
        float(jnp.max(jnp.abs(logits - ref))))

    print("KERNEL_OK")
</pallas_src>

<mosaic_0001>
module attributes {stable_mosaic.version = 11 : i64} {
  func.func @_mlp_kernel(%arg0: i32, %arg1: memref<8x784xf32, #tpu.memory_space<vmem>>, %arg2: memref<784x512xbf16, #tpu.memory_space<vmem>>, %arg3: memref<1x512xf32, #tpu.memory_space<vmem>>, %arg4: memref<512x384xbf16, #tpu.memory_space<vmem>>, %arg5: memref<1x384xf32, #tpu.memory_space<vmem>>, %arg6: memref<384x128xbf16, #tpu.memory_space<vmem>>, %arg7: memref<1x128xf32, #tpu.memory_space<vmem>>, %arg8: memref<8x128xf32, #tpu.memory_space<vmem>>) attributes {dimension_semantics = [#tpu.dimension_semantics<parallel>], iteration_bounds = array<i64: 1>, scalar_prefetch = 0 : i64, scratch_operands = 0 : i64, tpu.core_type = #tpu.core_type<tc>, window_params = [{transform_indices = @transform_0, window_bounds = array<i64: 8, 784>}, {pipeline_mode = #tpu.pipeline_mode<synchronous>, transform_indices = @transform_1, window_bounds = array<i64: 784, 512>}, {pipeline_mode = #tpu.pipeline_mode<synchronous>, transform_indices = @transform_2, window_bounds = array<i64: 1, 512>}, {pipeline_mode = #tpu.pipeline_mode<synchronous>, transform_indices = @transform_3, window_bounds = array<i64: 512, 384>}, {pipeline_mode = #tpu.pipeline_mode<synchronous>, transform_indices = @transform_4, window_bounds = array<i64: 1, 384>}, {pipeline_mode = #tpu.pipeline_mode<synchronous>, transform_indices = @transform_5, window_bounds = array<i64: 384, 128>}, {pipeline_mode = #tpu.pipeline_mode<synchronous>, transform_indices = @transform_6, window_bounds = array<i64: 1, 128>}, {transform_indices = @transform_7, window_bounds = array<i64: 8, 128>}]} {
    %c0 = arith.constant 0 : index
    %c0_0 = arith.constant 0 : index
    %0 = vector.load %arg1[%c0, %c0_0] : memref<8x784xf32, #tpu.memory_space<vmem>>, vector<8x784xf32>
    %1 = arith.truncf %0 : vector<8x784xf32> to vector<8x784xbf16>
    %c0_1 = arith.constant 0 : index
    %c0_2 = arith.constant 0 : index
    %2 = vector.load %arg2[%c0_1, %c0_2] : memref<784x512xbf16, #tpu.memory_space<vmem>>, vector<784x512xbf16>
    %cst = arith.constant dense<0.000000e+00> : vector<8x512xf32>
    %3 = tpu.matmul %1, %2, %cst {dimension_numbers = #tpu.dot_dimension_numbers<[1], [0], [0], [1], [0, 0, 1, 1], [], []>} : vector<8x784xbf16>, vector<784x512xbf16>, vector<8x512xf32> -> vector<8x512xf32>
    %c0_3 = arith.constant 0 : index
    %c0_4 = arith.constant 0 : index
    %4 = vector.load %arg3[%c0_3, %c0_4] : memref<1x512xf32, #tpu.memory_space<vmem>>, vector<1x512xf32>
    %5 = vector.broadcast %4 : vector<1x512xf32> to vector<8x512xf32>
    %6 = arith.addf %3, %5 : vector<8x512xf32>
    %cst_5 = arith.constant 0.000000e+00 : f32
    %7 = vector.broadcast %cst_5 : f32 to vector<8x512xf32>
    %8 = arith.maximumf %6, %7 : vector<8x512xf32>
    %9 = arith.truncf %8 : vector<8x512xf32> to vector<8x512xbf16>
    %c0_6 = arith.constant 0 : index
    %c0_7 = arith.constant 0 : index
    %10 = vector.load %arg4[%c0_6, %c0_7] : memref<512x384xbf16, #tpu.memory_space<vmem>>, vector<512x384xbf16>
    %cst_8 = arith.constant dense<0.000000e+00> : vector<8x384xf32>
    %11 = tpu.matmul %9, %10, %cst_8 {dimension_numbers = #tpu.dot_dimension_numbers<[1], [0], [0], [1], [0, 0, 1, 1], [], []>} : vector<8x512xbf16>, vector<512x384xbf16>, vector<8x384xf32> -> vector<8x384xf32>
    %c0_9 = arith.constant 0 : index
    %c0_10 = arith.constant 0 : index
    %12 = vector.load %arg5[%c0_9, %c0_10] : memref<1x384xf32, #tpu.memory_space<vmem>>, vector<1x384xf32>
    %13 = vector.broadcast %12 : vector<1x384xf32> to vector<8x384xf32>
    %14 = arith.addf %11, %13 : vector<8x384xf32>
    %15 = arith.negf %14 : vector<8x384xf32>
    %16 = math.exp %15 : vector<8x384xf32>
    %cst_11 = arith.constant 1.000000e+00 : f32
    %17 = vector.broadcast %cst_11 : f32 to vector<8x384xf32>
    %18 = arith.addf %17, %16 : vector<8x384xf32>
    %19 = arith.divf %17, %18 : vector<8x384xf32>
    %20 = arith.truncf %19 : vector<8x384xf32> to vector<8x384xbf16>
    %c0_12 = arith.constant 0 : index
    %c0_13 = arith.constant 0 : index
    %21 = vector.load %arg6[%c0_12, %c0_13] : memref<384x128xbf16, #tpu.memory_space<vmem>>, vector<384x128xbf16>
    %cst_14 = arith.constant dense<0.000000e+00> : vector<8x128xf32>
    %22 = tpu.matmul %20, %21, %cst_14 {dimension_numbers = #tpu.dot_dimension_numbers<[1], [0], [0], [1], [0, 0, 1, 1], [], []>} : vector<8x384xbf16>, vector<384x128xbf16>, vector<8x128xf32> -> vector<8x128xf32>
    %c0_15 = arith.constant 0 : index
    %c0_16 = arith.constant 0 : index
    %23 = vector.load %arg7[%c0_15, %c0_16] : memref<1x128xf32, #tpu.memory_space<vmem>>, vector<1x128xf32>
    %24 = vector.broadcast %23 : vector<1x128xf32> to vector<8x128xf32>
    %25 = arith.addf %22, %24 : vector<8x128xf32>
    %c0_17 = arith.constant 0 : index
    %c0_18 = arith.constant 0 : index
    %26 = vector.load %arg8[%c0_17, %c0_18] : memref<8x128xf32, #tpu.memory_space<vmem>>, vector<8x128xf32>
    tpu.vector_store %arg8[%c0_17, %c0_18], %25 {strides = array<i32>} : memref<8x128xf32, #tpu.memory_space<vmem>>, vector<8x128xf32>,
    return
  }
  func.func @transform_0(%arg0: i32) -> (i32, i32) {
    %c0_i32 = arith.constant 0 : i32
    %c0_i32_0 = arith.constant 0 : i32
    return %arg0, %c0_i32 : i32, i32
  }
  func.func @transform_1(%arg0: i32) -> (i32, i32) {
    %c0_i32 = arith.constant 0 : i32
    %c0_i32_0 = arith.constant 0 : i32
    %c0_i32_1 = arith.constant 0 : i32
    return %c0_i32, %c0_i32_0 : i32, i32
  }
  func.func @transform_2(%arg0: i32) -> (i32, i32) {
    %c0_i32 = arith.constant 0 : i32
    %c0_i32_0 = arith.constant 0 : i32
    %c0_i32_1 = arith.constant 0 : i32
    return %c0_i32, %c0_i32_0 : i32, i32
  }
  func.func @transform_3(%arg0: i32) -> (i32, i32) {
    %c0_i32 = arith.constant 0 : i32
    %c0_i32_0 = arith.constant 0 : i32
    %c0_i32_1 = arith.constant 0 : i32
    return %c0_i32, %c0_i32_0 : i32, i32
  }
  func.func @transform_4(%arg0: i32) -> (i32, i32) {
    %c0_i32 = arith.constant 0 : i32
    %c0_i32_0 = arith.constant 0 : i32
    %c0_i32_1 = arith.constant 0 : i32
    return %c0_i32, %c0_i32_0 : i32, i32
  }
  func.func @transform_5(%arg0: i32) -> (i32, i32) {
    %c0_i32 = arith.constant 0 : i32
    %c0_i32_0 = arith.constant 0 : i32
    %c0_i32_1 = arith.constant 0 : i32
    return %c0_i32, %c0_i32_0 : i32, i32
  }
  func.func @transform_6(%arg0: i32) -> (i32, i32) {
    %c0_i32 = arith.constant 0 : i32
    %c0_i32_0 = arith.constant 0 : i32
    %c0_i32_1 = arith.constant 0 : i32
    return %c0_i32, %c0_i32_0 : i32, i32
  }
  func.func @transform_7(%arg0: i32) -> (i32, i32) {
    %c0_i32 = arith.constant 0 : i32
    %c0_i32_0 = arith.constant 0 : i32
    return %arg0, %c0_i32 : i32, i32
  }
}

</mosaic_0001>

<bundles_post_ra>
// kernel: sequential_model_1.1
= control target key start
LH: loop header
LB: loop body
LE: loop exit
PB: predicated region body
PF: predicated region fallthrough
CT: control target
= control target key end

     0   :  { %12 = vsyncpa [#allocation3], 0  ;;  %s4175_s0 = inlined_call_operand.vmem [shape: f32[8,784], index: 0, kind: input, shape index: {}]   ;;  %s4176_s1 = inlined_call_operand.hbm [shape: bf16[784,512], index: 1, kind: input, shape index: {}]   ;;  %s4177_s2 = inlined_call_operand.vmem [shape: f32[1,512], index: 2, kind: input, shape index: {}]   ;;  %s4178_s3 = inlined_call_operand.vmem [shape: bf16[512,384], index: 3, kind: input, shape index: {}]   ;;  %s4179_s4 = inlined_call_operand.vmem [shape: f32[1,384], index: 4, kind: input, shape index: {}]   ;;  %s4180_s5 = inlined_call_operand.hbm [shape: bf16[384,128], index: 5, kind: input, shape index: {}]   ;;  %s4181_s6 = inlined_call_operand.vmem [shape: f32[1,128], index: 6, kind: input, shape index: {}]   ;;  %s4182_s7 = inlined_call_operand.hbm [shape: f32[8,128], index: 7, kind: output, shape index: {}]  }
   0x1   :  { %13 = vsyncpa [#allocation6], 0 }
   0x2   :  { %14 = vsyncpa [#allocation4], 0  ;;  %s3735_s24 = smov [#allocation2]   ;;  %s3663_s28 = scalar_lea.hbm %s4176_s1, 25088 }
   0x3   :  { %s22_s25 = sshll.u32 %s3735_s24, 4  ;;  %p3664_p0 = scmp.ne.s32.totalorder %s4176_s1, %s3663_s28  ;;  %s23_s25 = int_to_ptr.vmem [resolvable:$true] %s22_s25 }
   0x4   :  { %p3667_p1 = scmp.lt.u32.totalorder %s3663_s28, %s4176_s1 }
   0x6   :  { %p3669_p2 = pnand %p3667_p1, %p3664_p0 }
   0x8   :  { %3672 = shalt.err (!%p3669_p2)
}
   0x9   :  { %s3673_s10 = scalar_lea.vmem %s23_s25, 25088  ;;  %p3678_p4 = scmp.lt.s32.totalorder %s23_s25, %s23_s25 }
   0xa   :  { %p3674_p3 = scmp.ne.s32.totalorder %s23_s25, %s3673_s10  ;;  %p3679_p5 = scmp.lt.s32.totalorder %s3673_s10, %s3673_s10 }
   0xc   :  { %p3680_p6 = por %p3679_p5, %p3678_p4 }
   0xe   :  { %p3681_p7 = pnand %p3680_p6, %p3674_p3 }
  0x10   :  { %3684 = shalt.err (!%p3681_p7)
}
  0x11   :  { %s3736_s11 = smov 256   ;;  %s3737_s12 = smov 16  }
  0x12   :  { %28 = dma.hbm_to_vmem [thread:$0]  %s4176_s1, 25088, %s23_s25, [#allocation3], %s3736_s11, %s3736_s11, %s3737_s12  }
  0x13   :  { %s3738_s15 = smov [#allocation5]   ;;  %s3685_s19 = scalar_lea.hbm %s4180_s5, 3072 }
  0x14   :  { %s40_s16 = sshll.u32 %s3738_s15, 4  ;;  %p3686_p8 = scmp.ne.s32.totalorder %s4180_s5, %s3685_s19  ;;  %s41_s16 = int_to_ptr.vmem [resolvable:$true] %s40_s16 }
  0x15   :  { %p3689_p9 = scmp.lt.u32.totalorder %s3685_s19, %s4180_s5 }
  0x17   :  { %p3691_p10 = pnand %p3689_p9, %p3686_p8 }
  0x19   :  { %3694 = shalt.err (!%p3691_p10)
}
  0x1a   :  { %s3695_s24 = scalar_lea.vmem %s41_s16, 3072  ;;  %p3700_p12 = scmp.lt.s32.totalorder %s41_s16, %s41_s16 }
  0x1b   :  { %p3696_p11 = scmp.ne.s32.totalorder %s41_s16, %s3695_s24  ;;  %p3701_p13 = scmp.lt.s32.totalorder %s3695_s24, %s3695_s24 }
  0x1d   :  { %p3702_p0 = por %p3701_p13, %p3700_p12 }
  0x1f   :  { %p3703_p1 = pnand %p3702_p0, %p3696_p11 }
  0x21   :  { %3706 = shalt.err (!%p3703_p1)
}
  0x22   :  { %s3739_s1 = smov 64   ;;  %s3740_s25 = smov 4  }
  0x23   :  { %46 = dma.hbm_to_vmem [thread:$0]  %s4180_s5, 3072, %s41_s16, [#allocation6], %s3739_s1, %s3739_s1, %s3740_s25  }
  0x24   :  { %3729 = dma.done.wait [#allocation3], 25088  }
  0x25   :  { %3730 = vsyncadd [#allocation3], 4294942208 }
  0x26   :  { %3731 = dma.done.wait [#allocation6], 3072  }
  0x27   :  { %3732 = vsyncadd [#allocation6], 4294964224  ;;  %v3205_v0 = vld [vmem:[#allocation2 + $0x4] ss:$16 sps:$4 sm:$0xff]   ;;  %v3207_v1 = vld [vmem:[#allocation2 + $0xc] ss:$16 sps:$4 sm:$0xff]  }
  0x28   :  { %1272 = vmatprep.subr.bf16.mxu0 %v3205_v0  ;;  %v3209_v2 = vld [vmem:[#allocation2] ss:$16 sps:$4 sm:$0xff]   ;;  %v3210_v3 = vld [vmem:[#allocation2 + $0x8] ss:$16 sps:$4 sm:$0xff]   ;;  %1436 = vmatprep.subr.bf16.mxu1 %v3207_v1  ;;  %v3211_v4 = vld [vmem:[#allocation2 + $0x24] ss:$16 sps:$4 sm:$0xff]  }
  0x29   :  { %1273 = vmatpush1.bf16.msra.mxu0 %v3209_v2  ;;  %1437 = vmatpush1.bf16.msra.mxu1 %v3210_v3  ;;  %v3213_v5 = vld [vmem:[#allocation2 + $0x2c] ss:$16 sps:$4 sm:$0xff]   ;;  %v3215_v6 = vld [vmem:[#allocation2 + $0x20] ss:$16 sps:$4 sm:$0xff]   ;;  %v3216_v7 = vld [vmem:[#allocation2 + $0x28] ss:$16 sps:$4 sm:$0xff]  }
  0x2a   :  { %1274 = vmatprep.subr.bf16.mxu0 %v3211_v4  ;;  %1438 = vmatprep.subr.bf16.mxu1 %v3213_v5  ;;  %v3217_v8 = vld [vmem:[#allocation2 + $0x44] ss:$16 sps:$4 sm:$0xff]   ;;  %v3219_v9 = vld [vmem:[#allocation2 + $0x4c] ss:$16 sps:$4 sm:$0xff]   ;;  %v3221_v10 = vld [vmem:[#allocation2 + $0x40] ss:$16 sps:$4 sm:$0xff]  }
  0x2b   :  { %v3222_v11 = vld [vmem:[#allocation2 + $0x48] ss:$16 sps:$4 sm:$0xff]   ;;  %v3223_v12 = vld [vmem:[#allocation2 + $0x64] ss:$16 sps:$4 sm:$0xff]   ;;  %v3225_v13 = vld [vmem:[#allocation2 + $0x6c] ss:$16 sps:$4 sm:$0xff]  }
  0x2c   :  { %v3227_v14 = vld [vmem:[#allocation2 + $0x60] ss:$16 sps:$4 sm:$0xff]   ;;  %v3228_v15 = vld [vmem:[#allocation2 + $0x68] ss:$16 sps:$4 sm:$0xff]   ;;  %v3229_v16 = vld [vmem:[#allocation2 + $0x84] ss:$16 sps:$4 sm:$0xff]  }
  0x2d   :  { %1275 = vmatpush1.bf16.msra.mxu0 %v3215_v6  ;;  %1439 = vmatpush1.bf16.msra.mxu1 %v3216_v7  ;;  %v3231_v17 = vld [vmem:[#allocation2 + $0x8c] ss:$16 sps:$4 sm:$0xff]   ;;  %v3233_v18 = vld [vmem:[#allocation2 + $0x80] ss:$16 sps:$4 sm:$0xff]   ;;  %v3234_v19 = vld [vmem:[#allocation2 + $0x88] ss:$16 sps:$4 sm:$0xff]  }
  0x2e   :  { %1276 = vmatprep.subr.bf16.mxu0 %v3217_v8  ;;  %1440 = vmatprep.subr.bf16.mxu1 %v3219_v9  ;;  %v3235_v20 = vld [vmem:[#allocation2 + $0xa4] ss:$16 sps:$4 sm:$0xff]   ;;  %v3237_v21 = vld [vmem:[#allocation2 + $0xac] ss:$16 sps:$4 sm:$0xff]   ;;  %v3239_v22 = vld [vmem:[#allocation2 + $0xa0] ss:$16 sps:$4 sm:$0xff]  }
  0x2f   :  { %v3240_v23 = vld [vmem:[#allocation2 + $0xa8] ss:$16 sps:$4 sm:$0xff]   ;;  %v3241_v24 = vld [vmem:[#allocation2 + $0xc4] ss:$16 sps:$4 sm:$0xff]   ;;  %v3243_v25 = vld [vmem:[#allocation2 + $0xcc] ss:$16 sps:$4 sm:$0xff]  }
  0x30   :  { %v3245_v26 = vld [vmem:[#allocation2 + $0xc0] ss:$16 sps:$4 sm:$0xff]   ;;  %v3246_v27 = vld [vmem:[#allocation2 + $0xc8] ss:$16 sps:$4 sm:$0xff]   ;;  %v3247_v28 = vld [vmem:[#allocation2 + $0xe4] ss:$16 sps:$4 sm:$0xff]  }
  0x31   :  { %1277 = vmatpush1.bf16.msra.mxu0 %v3221_v10  ;;  %1441 = vmatpush1.bf16.msra.mxu1 %v3222_v11  ;;  %v3249_v29 = vld [vmem:[#allocation2 + $0xec] ss:$16 sps:$4 sm:$0xff]   ;;  %v3251_v30 = vld [vmem:[#allocation2 + $0xe0] ss:$16 sps:$4 sm:$0xff]   ;;  %v3252_v31 = vld [vmem:[#allocation2 + $0xe8] ss:$16 sps:$4 sm:$0xff]  }
  0x32   :  { %1278 = vmatprep.subr.bf16.mxu0 %v3223_v12  ;;  %1442 = vmatprep.subr.bf16.mxu1 %v3225_v13  ;;  %v3253_v32 = vld [vmem:[#allocation2 + $0x104] ss:$16 sps:$4 sm:$0xff]   ;;  %v3255_v33 = vld [vmem:[#allocation2 + $0x10c] ss:$16 sps:$4 sm:$0xff]   ;;  %v3257_v34 = vld [vmem:[#allocation2 + $0x100] ss:$16 sps:$4 sm:$0xff]  }
  0x33   :  { %v3258_v35 = vld [vmem:[#allocation2 + $0x108] ss:$16 sps:$4 sm:$0xff]   ;;  %v3259_v36 = vld [vmem:[#allocation2 + $0x124] ss:$16 sps:$4 sm:$0xff]   ;;  %v3261_v37 = vld [vmem:[#allocation2 + $0x12c] ss:$16 sps:$4 sm:$0xff]  }
  0x34   :  { %v3263_v38 = vld [vmem:[#allocation2 + $0x120] ss:$16 sps:$4 sm:$0xff]   ;;  %v3264_v39 = vld [vmem:[#allocation2 + $0x128] ss:$16 sps:$4 sm:$0xff]   ;;  %v3265_v40 = vld [vmem:[#allocation2 + $0x144] ss:$16 sps:$4 sm:$0xff]  }
  0x35   :  { %1279 = vmatpush1.bf16.msra.mxu0 %v3227_v14  ;;  %1443 = vmatpush1.bf16.msra.mxu1 %v3228_v15  ;;  %v3267_v41 = vld [vmem:[#allocation2 + $0x14c] ss:$16 sps:$4 sm:$0xff]   ;;  %v3269_v42 = vld [vmem:[#allocation2 + $0x140] ss:$16 sps:$4 sm:$0xff]   ;;  %v3270_v43 = vld [vmem:[#allocation2 + $0x148] ss:$16 sps:$4 sm:$0xff]  }
  0x36   :  { %1280 = vmatprep.subr.bf16.mxu0 %v3229_v16  ;;  %1444 = vmatprep.subr.bf16.mxu1 %v3231_v17  ;;  %v3271_v44 = vld [vmem:[#allocation2 + $0x164] ss:$16 sps:$4 sm:$0xff]   ;;  %v3273_v45 = vld [vmem:[#allocation2 + $0x16c] ss:$16 sps:$4 sm:$0xff]   ;;  %v3275_v47 = vld [vmem:[#allocation2 + $0x160] ss:$16 sps:$4 sm:$0xff]  }
  0x37   :  { %v57_v46 = vld [vmem:[%s4175_s0 + $0x8] sm:$0xff]  ;;  %v3277_v50 = vld [vmem:[#allocation2 + $0x184] ss:$16 sps:$4 sm:$0xff]   ;;  %v3281_v52 = vld [vmem:[#allocation2 + $0x180] ss:$16 sps:$4 sm:$0xff]   ;;  %vm1268_vm0 = vcmask 130048  }
  0x38   :  { %v64_v48 = vpack.c.bf16 %v57_v46, %v57_v46  ;;  %v3276_v49 = vld [vmem:[#allocation2 + $0x168] ss:$16 sps:$4 sm:$0xff]   ;;  %v3279_v51 = vld [vmem:[#allocation2 + $0x18c] ss:$16 sps:$4 sm:$0xff]   ;;  %v3283_v54 = vld [vmem:[#allocation2 + $0x1a4] ss:$16 sps:$4 sm:$0xff]  }
  0x39   :  { %1281 = vmatpush1.bf16.msra.mxu0 %v3233_v18  ;;  %1445 = vmatpush1.bf16.msra.mxu1 %v3234_v19  ;;  %v3282_v53 = vld [vmem:[#allocation2 + $0x188] ss:$16 sps:$4 sm:$0xff]   ;;  %v3285_v55 = vld [vmem:[#allocation2 + $0x1ac] ss:$16 sps:$4 sm:$0xff]   ;;  %v3287_v56 = vld [vmem:[#allocation2 + $0x1a0] ss:$16 sps:$4 sm:$0xff]  }
  0x3a   :  { %1282 = vmatprep.subr.bf16.mxu0 %v3235_v20  ;;  %1446 = vmatprep.subr.bf16.mxu1 %v3237_v21  ;;  %v3288_v57 = vld [vmem:[#allocation2 + $0x1a8] ss:$16 sps:$4 sm:$0xff]   ;;  %v3289_v58 = vld [vmem:[#allocation2 + $0x1c4] ss:$16 sps:$4 sm:$0xff]   ;;  %v3291_v59 = vld [vmem:[#allocation2 + $0x1cc] ss:$16 sps:$4 sm:$0xff]  }
  0x3b   :  { %1304 = vmatprep.mubr.bf16.mxu0 %v64_v48  ;;  %1468 = vmatprep.mubr.bf16.mxu1 %v64_v48  ;;  %v3293_v60 = vld [vmem:[#allocation2 + $0x1c0] ss:$16 sps:$4 sm:$0xff]   ;;  %v3294_v61 = vld [vmem:[#allocation2 + $0x1c8] ss:$16 sps:$4 sm:$0xff]   ;;  %v3295_v62 = vld [vmem:[#allocation2 + $0x1e4] ss:$16 sps:$4 sm:$0xff]  }
  0x3c   :  { %v3297_v63 = vld [vmem:[#allocation2 + $0x1ec] ss:$16 sps:$4 sm:$0xff]   ;;  %v3299_v0 = vld [vmem:[#allocation2 + $0x1e0] ss:$16 sps:$4 sm:$0xff]   ;;  %v3300_v1 = vld [vmem:[#allocation2 + $0x1e8] ss:$16 sps:$4 sm:$0xff]  }
  0x3d   :  { %1283 = vmatpush1.bf16.msra.mxu0 %v3239_v22  ;;  %1447 = vmatpush1.bf16.msra.mxu1 %v3240_v23  ;;  %v56_v2 = vld [vmem:[%s4175_s0] sm:$0xff]  ;;  %v3306_v4 = vld [vmem:[#allocation2 + $0x20c] ss:$16 sps:$4 sm:$0xff]   ;;  %v3304_v7 = vld [vmem:[#allocation2 + $0x208] ss:$16 sps:$4 sm:$0xff]   ;;  %vm3743_vm1 = vmmov 0  }
  0x3e   :  { %1284 = vmatprep.subr.bf16.mxu0 %v3241_v24  ;;  %1448 = vmatprep.subr.bf16.mxu1 %v3243_v25  ;;  %v3303_v3 = vld [vmem:[#allocation2 + $0x204] ss:$16 sps:$4 sm:$0xff]   ;;  %v63_v5 = vpack.c.bf16 %v56_v2, %v56_v2  ;;  %v3301_v6 = vld [vmem:[#allocation2 + $0x200] ss:$16 sps:$4 sm:$0xff]   ;;  %v3312_v9 = vld [vmem:[#allocation2 + $0x22c] ss:$16 sps:$4 sm:$0xff]  }
  0x3f   :  { %v3309_v8 = vld [vmem:[#allocation2 + $0x224] ss:$16 sps:$4 sm:$0xff]   ;;  %v3307_v10 = vld [vmem:[#allocation2 + $0x220] ss:$16 sps:$4 sm:$0xff]   ;;  %v3310_v11 = vld [vmem:[#allocation2 + $0x228] ss:$16 sps:$4 sm:$0xff]  }
  0x40   :  { %v3315_v12 = vld [vmem:[#allocation2 + $0x244] ss:$16 sps:$4 sm:$0xff]   ;;  %v3318_v13 = vld [vmem:[#allocation2 + $0x24c] ss:$16 sps:$4 sm:$0xff]   ;;  %v3313_v14 = vld [vmem:[#allocation2 + $0x240] ss:$16 sps:$4 sm:$0xff]  }
  0x41   :  { %1285 = vmatpush1.bf16.msra.mxu0 %v3245_v26  ;;  %1449 = vmatpush1.bf16.msra.mxu1 %v3246_v27  ;;  %v3316_v15 = vld [vmem:[#allocation2 + $0x248] ss:$16 sps:$4 sm:$0xff]   ;;  %v3321_v16 = vld [vmem:[#allocation2 + $0x264] ss:$16 sps:$4 sm:$0xff]   ;;  %v3324_v17 = vld [vmem:[#allocation2 + $0x26c] ss:$16 sps:$4 sm:$0xff]  }
  0x42   :  { %1286 = vmatprep.subr.bf16.mxu0 %v3247_v28  ;;  %1450 = vmatprep.subr.bf16.mxu1 %v3249_v29  ;;  %v3319_v18 = vld [vmem:[#allocation2 + $0x260] ss:$16 sps:$4 sm:$0xff]   ;;  %v3322_v19 = vld [vmem:[#allocation2 + $0x268] ss:$16 sps:$4 sm:$0xff]   ;;  %v3327_v20 = vld [vmem:[#allocation2 + $0x284] ss:$16 sps:$4 sm:$0xff]  }
  0x43   :  { %v3330_v21 = vld [vmem:[#allocation2 + $0x28c] ss:$16 sps:$4 sm:$0xff]   ;;  %v3325_v22 = vld [vmem:[#allocation2 + $0x280] ss:$16 sps:$4 sm:$0xff]   ;;  %v3328_v23 = vld [vmem:[#allocation2 + $0x288] ss:$16 sps:$4 sm:$0xff]  }
  0x44   :  { %v3333_v24 = vld [vmem:[#allocation2 + $0x2a4] ss:$16 sps:$4 sm:$0xff]   ;;  %v3336_v25 = vld [vmem:[#allocation2 + $0x2ac] ss:$16 sps:$4 sm:$0xff]   ;;  %v3331_v26 = vld [vmem:[#allocation2 + $0x2a0] ss:$16 sps:$4 sm:$0xff]  }
  0x45   :  { %1287 = vmatpush1.bf16.msra.mxu0 %v3251_v30  ;;  %1451 = vmatpush1.bf16.msra.mxu1 %v3252_v31  ;;  %v3334_v27 = vld [vmem:[#allocation2 + $0x2a8] ss:$16 sps:$4 sm:$0xff]   ;;  %v3339_v28 = vld [vmem:[#allocation2 + $0x2c4] ss:$16 sps:$4 sm:$0xff]   ;;  %v3342_v29 = vld [vmem:[#allocation2 + $0x2cc] ss:$16 sps:$4 sm:$0xff]  }
  0x46   :  { %1288 = vmatprep.subr.bf16.mxu0 %v3253_v32  ;;  %1452 = vmatprep.subr.bf16.mxu1 %v3255_v33  ;;  %v59_v30 = vld [vmem:[%s4175_s0 + $0x18] sm:$0xff]  ;;  %v3337_v31 = vld [vmem:[#allocation2 + $0x2c0] ss:$16 sps:$4 sm:$0xff]   ;;  %v3363_v46 = vld [vmem:[#allocation2 + $0x344] ss:$16 sps:$4 sm:$0xff]   ;;  %s3744_s27 = smov [#allocation7]  }
  0x47   :  { %v66_v32 = vpack.c.bf16 %v59_v30, %v59_v30  ;;  %v3340_v33 = vld [vmem:[#allocation2 + $0x2c8] ss:$16 sps:$4 sm:$0xff]   ;;  %v3361_v48 = vld [vmem:[#allocation2 + $0x340] ss:$16 sps:$4 sm:$0xff]   ;;  %v3393_v2 = vld [vmem:[#allocation2 + $0x3e4] ss:$16 sps:$4 sm:$0xff]  }
  0x48   :  { %v3429_v30 = vld [vmem:[#allocation2 + $0x4a4] ss:$16 sps:$4 sm:$0xff]   ;;  %s2734_s5 = sshll.u32 %s3744_s27, 4  ;;  %s2735_s5 = int_to_ptr.vmem [resolvable:$true] %s2734_s5 }
  0x49   :  { %1289 = vmatpush1.bf16.msra.mxu0 %v3257_v34  ;;  %1453 = vmatpush1.bf16.msra.mxu1 %v3258_v35  ;;  %v3345_v34 = vld [vmem:[#allocation2 + $0x2e4] ss:$16 sps:$4 sm:$0xff]   ;;  %v3348_v35 = vld [vmem:[#allocation2 + $0x2ec] ss:$16 sps:$4 sm:$0xff]   ;;  %p3712_p3 = scmp.lt.s32.totalorder %s2735_s5, %s2735_s5 }
  0x4a   :  { %1290 = vmatprep.subr.bf16.mxu0 %v3259_v36  ;;  %1454 = vmatprep.subr.bf16.mxu1 %v3261_v37  ;;  %v3343_v36 = vld [vmem:[#allocation2 + $0x2e0] ss:$16 sps:$4 sm:$0xff]   ;;  %v3346_v37 = vld [vmem:[#allocation2 + $0x2e8] ss:$16 sps:$4 sm:$0xff]  }
  0x4d   :  { %1291 = vmatpush1.bf16.msra.mxu0 %v3263_v38  ;;  %1455 = vmatpush1.bf16.msra.mxu1 %v3264_v39  ;;  %v3351_v38 = vld [vmem:[#allocation2 + $0x304] ss:$16 sps:$4 sm:$0xff]   ;;  %v3354_v39 = vld [vmem:[#allocation2 + $0x30c] ss:$16 sps:$4 sm:$0xff]  }
  0x4e   :  { %1292 = vmatprep.subr.bf16.mxu0 %v3265_v40  ;;  %1456 = vmatprep.subr.bf16.mxu1 %v3267_v41  ;;  %v3349_v40 = vld [vmem:[#allocation2 + $0x300] ss:$16 sps:$4 sm:$0xff]   ;;  %v3352_v41 = vld [vmem:[#allocation2 + $0x308] ss:$16 sps:$4 sm:$0xff]  }
  0x51   :  { %1293 = vmatpush1.bf16.msra.mxu0 %v3269_v42  ;;  %1457 = vmatpush1.bf16.msra.mxu1 %v3270_v43  ;;  %v3357_v42 = vld [vmem:[#allocation2 + $0x324] ss:$16 sps:$4 sm:$0xff]   ;;  %v3360_v43 = vld [vmem:[#allocation2 + $0x32c] ss:$16 sps:$4 sm:$0xff]  }
  0x52   :  { %1294 = vmatprep.subr.bf16.mxu0 %v3271_v44  ;;  %1458 = vmatprep.subr.bf16.mxu1 %v3273_v45  ;;  %v3355_v44 = vld [vmem:[#allocation2 + $0x320] ss:$16 sps:$4 sm:$0xff]   ;;  %v3358_v45 = vld [vmem:[#allocation2 + $0x328] ss:$16 sps:$4 sm:$0xff]  }
  0x55   :  { %1295 = vmatpush1.bf16.msra.mxu0 %v3275_v47  ;;  %1459 = vmatpush1.bf16.msra.mxu1 %v3276_v49  ;;  %v3366_v47 = vld [vmem:[#allocation2 + $0x34c] ss:$16 sps:$4 sm:$0xff]   ;;  %v3364_v49 = vld [vmem:[#allocation2 + $0x348] ss:$16 sps:$4 sm:$0xff]  }
  0x56   :  { %1296 = vmatprep.subr.bf16.mxu0 %v3277_v50  ;;  %1460 = vmatprep.subr.bf16.mxu1 %v3279_v51  ;;  %v3369_v50 = vld [vmem:[#allocation2 + $0x364] ss:$16 sps:$4 sm:$0xff]   ;;  %v3372_v51 = vld [vmem:[#allocation2 + $0x36c] ss:$16 sps:$4 sm:$0xff]  }
  0x59   :  { %1297 = vmatpush1.bf16.msra.mxu0 %v3281_v52  ;;  %1461 = vmatpush1.bf16.msra.mxu1 %v3282_v53  ;;  %v3367_v52 = vld [vmem:[#allocation2 + $0x360] ss:$16 sps:$4 sm:$0xff]   ;;  %v3370_v53 = vld [vmem:[#allocation2 + $0x368] ss:$16 sps:$4 sm:$0xff]  }
  0x5a   :  { %1298 = vmatprep.subr.bf16.mxu0 %v3283_v54  ;;  %1462 = vmatprep.subr.bf16.mxu1 %v3285_v55  ;;  %v3375_v54 = vld [vmem:[#allocation2 + $0x384] ss:$16 sps:$4 sm:$0xff]   ;;  %v3378_v55 = vld [vmem:[#allocation2 + $0x38c] ss:$16 sps:$4 sm:$0xff]  }
  0x5d   :  { %1299 = vmatpush1.bf16.msra.mxu0 %v3287_v56  ;;  %1463 = vmatpush1.bf16.msra.mxu1 %v3288_v57  ;;  %v3373_v56 = vld [vmem:[#allocation2 + $0x380] ss:$16 sps:$4 sm:$0xff]   ;;  %v3376_v57 = vld [vmem:[#allocation2 + $0x388] ss:$16 sps:$4 sm:$0xff]  }
  0x5e   :  { %1300 = vmatprep.subr.bf16.mxu0 %v3289_v58  ;;  %1464 = vmatprep.subr.bf16.mxu1 %v3291_v59  ;;  %v3381_v58 = vld [vmem:[#allocation2 + $0x3a4] ss:$16 sps:$4 sm:$0xff]   ;;  %v3384_v59 = vld [vmem:[#allocation2 + $0x3ac] ss:$16 sps:$4 sm:$0xff]  }
  0x61   :  { %1301 = vmatpush1.bf16.msra.mxu0 %v3293_v60  ;;  %1465 = vmatpush1.bf16.msra.mxu1 %v3294_v61  ;;  %v3379_v60 = vld [vmem:[#allocation2 + $0x3a0] ss:$16 sps:$4 sm:$0xff]   ;;  %v3382_v61 = vld [vmem:[#allocation2 + $0x3a8] ss:$16 sps:$4 sm:$0xff]  }
  0x62   :  { %1302 = vmatprep.subr.bf16.mxu0 %v3295_v62  ;;  %1466 = vmatprep.subr.bf16.mxu1 %v3297_v63  ;;  %v3387_v62 = vld [vmem:[#allocation2 + $0x3c4] ss:$16 sps:$4 sm:$0xff]   ;;  %v3390_v63 = vld [vmem:[#allocation2 + $0x3cc] ss:$16 sps:$4 sm:$0xff]  }
  0x65   :  { %1303 = vmatpush1.bf16.msra.mxu0 %v3299_v0  ;;  %1467 = vmatpush1.bf16.msra.mxu1 %v3300_v1  ;;  %v3385_v0 = vld [vmem:[#allocation2 + $0x3c0] ss:$16 sps:$4 sm:$0xff]   ;;  %v3388_v1 = vld [vmem:[#allocation2 + $0x3c8] ss:$16 sps:$4 sm:$0xff]  }
  0x66   :  { %1313 = vmatprep.subr.bf16.mxu0 %v3303_v3  ;;  %1477 = vmatprep.subr.bf16.mxu1 %v3306_v4  ;;  %v3396_v3 = vld [vmem:[#allocation2 + $0x3ec] ss:$16 sps:$4 sm:$0xff]   ;;  %v3391_v4 = vld [vmem:[#allocation2 + $0x3e0] ss:$16 sps:$4 sm:$0xff]  }
  0x68   :  { %1305 = vmatmul.mubr.bf16.vlgmr.msra.gmra.mrb[0].mxu0 %v63_v5  ;;  %1469 = vmatmul.mubr.bf16.vlgmr.msra.gmra.mrb[0].mxu1 %v63_v5  ;;  %v3394_v5 = vld [vmem:[#allocation2 + $0x3e8] ss:$16 sps:$4 sm:$0xff]  }
  0x69   :  { %1314 = vmatpush1.bf16.msra.mxu0 %v3301_v6  ;;  %1478 = vmatpush1.bf16.msra.mxu1 %v3304_v7  ;;  %v3399_v6 = vld [vmem:[#allocation2 + $0x404] ss:$16 sps:$4 sm:$0xff]  }
  0x6a   :  { %1315 = vmatprep.subr.bf16.mxu0 %v3309_v8  ;;  %1479 = vmatprep.subr.bf16.mxu1 %v3312_v9  ;;  %v58_v7 = vld [vmem:[%s4175_s0 + $0x10] sm:$0xff]  ;;  %v3402_v8 = vld [vmem:[#allocation2 + $0x40c] ss:$16 sps:$4 sm:$0xff]  }
  0x6b   :  { %1345 = vmatprep.mubr.bf16.mxu0 %v66_v32  ;;  %1509 = vmatprep.mubr.bf16.mxu1 %v66_v32  ;;  %v3397_v9 = vld [vmem:[#allocation2 + $0x400] ss:$16 sps:$4 sm:$0xff]  }
  0x6c   :  { %v3427_v32 = vld [vmem:[#allocation2 + $0x4a0] ss:$16 sps:$4 sm:$0xff]  }
  0x6d   :  { %1316 = vmatpush1.bf16.msra.mxu0 %v3307_v10  ;;  %1480 = vmatpush1.bf16.msra.mxu1 %v3310_v11  ;;  %v65_v10 = vpack.c.bf16 %v58_v7, %v58_v7  ;;  %v3400_v11 = vld [vmem:[#allocation2 + $0x408] ss:$16 sps:$4 sm:$0xff]   ;;  %v3492_v7 = vld [vmem:[#allocation2 + $0x5ec] ss:$16 sps:$4 sm:$0xff]  }
  0x6e   :  { %1317 = vmatprep.subr.bf16.mxu0 %v3315_v12  ;;  %1481 = vmatprep.subr.bf16.mxu1 %v3318_v13  ;;  %v3405_v12 = vld [vmem:[#allocation2 + $0x424] ss:$16 sps:$4 sm:$0xff]   ;;  %v3408_v13 = vld [vmem:[#allocation2 + $0x42c] ss:$16 sps:$4 sm:$0xff]  }
  0x71   :  { %1318 = vmatpush1.bf16.msra.mxu0 %v3313_v14  ;;  %1482 = vmatpush1.bf16.msra.mxu1 %v3316_v15  ;;  %v61_v14 = vld [vmem:[%s4175_s0 + $0x28] sm:$0xff] }
  0x72   :  { %1319 = vmatprep.subr.bf16.mxu0 %v3321_v16  ;;  %1483 = vmatprep.subr.bf16.mxu1 %v3324_v17  ;;  %v68_v15 = vpack.c.bf16 %v61_v14, %v61_v14  ;;  %v3403_v16 = vld [vmem:[#allocation2 + $0x420] ss:$16 sps:$4 sm:$0xff]   ;;  %v3406_v17 = vld [vmem:[#allocation2 + $0x428] ss:$16 sps:$4 sm:$0xff]  }
  0x73   :  { %v3496_v14 = vld [vmem:[#allocation2 + $0x608] ss:$16 sps:$4 sm:$0xff]  }
  0x75   :  { %1320 = vmatpush1.bf16.msra.mxu0 %v3319_v18  ;;  %1484 = vmatpush1.bf16.msra.mxu1 %v3322_v19  ;;  %v3411_v18 = vld [vmem:[#allocation2 + $0x444] ss:$16 sps:$4 sm:$0xff]   ;;  %v3414_v19 = vld [vmem:[#allocation2 + $0x44c] ss:$16 sps:$4 sm:$0xff]  }
  0x76   :  { %1321 = vmatprep.subr.bf16.mxu0 %v3327_v20  ;;  %1485 = vmatprep.subr.bf16.mxu1 %v3330_v21  ;;  %v3409_v20 = vld [vmem:[#allocation2 + $0x440] ss:$16 sps:$4 sm:$0xff]   ;;  %v3412_v21 = vld [vmem:[#allocation2 + $0x448] ss:$16 sps:$4 sm:$0xff]  }
  0x79   :  { %1322 = vmatpush1.bf16.msra.mxu0 %v3325_v22  ;;  %1486 = vmatpush1.bf16.msra.mxu1 %v3328_v23  ;;  %v3417_v22 = vld [vmem:[#allocation2 + $0x464] ss:$16 sps:$4 sm:$0xff]   ;;  %v3420_v23 = vld [vmem:[#allocation2 + $0x46c] ss:$16 sps:$4 sm:$0xff]  }
  0x7a   :  { %1323 = vmatprep.subr.bf16.mxu0 %v3333_v24  ;;  %1487 = vmatprep.subr.bf16.mxu1 %v3336_v25  ;;  %v3415_v24 = vld [vmem:[#allocation2 + $0x460] ss:$16 sps:$4 sm:$0xff]   ;;  %v3418_v25 = vld [vmem:[#allocation2 + $0x468] ss:$16 sps:$4 sm:$0xff]  }
  0x7d   :  { %1324 = vmatpush1.bf16.msra.mxu0 %v3331_v26  ;;  %1488 = vmatpush1.bf16.msra.mxu1 %v3334_v27  ;;  %v3423_v26 = vld [vmem:[#allocation2 + $0x484] ss:$16 sps:$4 sm:$0xff]   ;;  %v3426_v27 = vld [vmem:[#allocation2 + $0x48c] ss:$16 sps:$4 sm:$0xff]  }
  0x7e   :  { %1325 = vmatprep.subr.bf16.mxu0 %v3339_v28  ;;  %1489 = vmatprep.subr.bf16.mxu1 %v3342_v29  ;;  %v3421_v28 = vld [vmem:[#allocation2 + $0x480] ss:$16 sps:$4 sm:$0xff]   ;;  %v3424_v29 = vld [vmem:[#allocation2 + $0x488] ss:$16 sps:$4 sm:$0xff]  }
  0x81   :  { %1326 = vmatpush1.bf16.msra.mxu0 %v3337_v31  ;;  %1490 = vmatpush1.bf16.msra.mxu1 %v3340_v33  ;;  %v3432_v31 = vld [vmem:[#allocation2 + $0x4ac] ss:$16 sps:$4 sm:$0xff]   ;;  %v3430_v33 = vld [vmem:[#allocation2 + $0x4a8] ss:$16 sps:$4 sm:$0xff]  }
  0x82   :  { %1327 = vmatprep.subr.bf16.mxu0 %v3345_v34  ;;  %1491 = vmatprep.subr.bf16.mxu1 %v3348_v35  ;;  %v3435_v34 = vld [vmem:[#allocation2 + $0x4c4] ss:$16 sps:$4 sm:$0xff]   ;;  %v3438_v35 = vld [vmem:[#allocation2 + $0x4cc] ss:$16 sps:$4 sm:$0xff]  }
  0x85   :  { %1328 = vmatpush1.bf16.msra.mxu0 %v3343_v36  ;;  %1492 = vmatpush1.bf16.msra.mxu1 %v3346_v37  ;;  %v3433_v36 = vld [vmem:[#allocation2 + $0x4c0] ss:$16 sps:$4 sm:$0xff]   ;;  %v3436_v37 = vld [vmem:[#allocation2 + $0x4c8] ss:$16 sps:$4 sm:$0xff]  }
  0x86   :  { %1329 = vmatprep.subr.bf16.mxu0 %v3351_v38  ;;  %1493 = vmatprep.subr.bf16.mxu1 %v3354_v39  ;;  %v3441_v38 = vld [vmem:[#allocation2 + $0x4e4] ss:$16 sps:$4 sm:$0xff]   ;;  %v3444_v39 = vld [vmem:[#allocation2 + $0x4ec] ss:$16 sps:$4 sm:$0xff]  }
  0x89   :  { %1330 = vmatpush1.bf16.msra.mxu0 %v3349_v40  ;;  %1494 = vmatpush1.bf16.msra.mxu1 %v3352_v41  ;;  %v3439_v40 = vld [vmem:[#allocation2 + $0x4e0] ss:$16 sps:$4 sm:$0xff]   ;;  %v3442_v41 = vld [vmem:[#allocation2 + $0x4e8] ss:$16 sps:$4 sm:$0xff]  }
  0x8a   :  { %1331 = vmatprep.subr.bf16.mxu0 %v3357_v42  ;;  %1495 = vmatprep.subr.bf16.mxu1 %v3360_v43  ;;  %v3447_v42 = vld [vmem:[#allocation2 + $0x504] ss:$16 sps:$4 sm:$0xff]   ;;  %v3450_v43 = vld [vmem:[#allocation2 + $0x50c] ss:$16 sps:$4 sm:$0xff]  }
  0x8d   :  { %1332 = vmatpush1.bf16.msra.mxu0 %v3355_v44  ;;  %1496 = vmatpush1.bf16.msra.mxu1 %v3358_v45  ;;  %v3445_v44 = vld [vmem:[#allocation2 + $0x500] ss:$16 sps:$4 sm:$0xff]   ;;  %v3448_v45 = vld [vmem:[#allocation2 + $0x508] ss:$16 sps:$4 sm:$0xff]  }
  0x8e   :  { %1333 = vmatprep.subr.bf16.mxu0 %v3363_v46  ;;  %1497 = vmatprep.subr.bf16.mxu1 %v3366_v47  ;;  %v3453_v46 = vld [vmem:[#allocation2 + $0x524] ss:$16 sps:$4 sm:$0xff]   ;;  %v3456_v47 = vld [vmem:[#allocation2 + $0x52c] ss:$16 sps:$4 sm:$0xff]  }
  0x91   :  { %1334 = vmatpush1.bf16.msra.mxu0 %v3361_v48  ;;  %1498 = vmatpush1.bf16.msra.mxu1 %v3364_v49  ;;  %v3451_v48 = vld [vmem:[#allocation2 + $0x520] ss:$16 sps:$4 sm:$0xff]   ;;  %v3454_v49 = vld [vmem:[#allocation2 + $0x528] ss:$16 sps:$4 sm:$0xff]  }
  0x92   :  { %1335 = vmatprep.subr.bf16.mxu0 %v3369_v50  ;;  %1499 = vmatprep.subr.bf16.mxu1 %v3372_v51  ;;  %v3459_v50 = vld [vmem:[#allocation2 + $0x544] ss:$16 sps:$4 sm:$0xff]   ;;  %v3462_v51 = vld [vmem:[#allocation2 + $0x54c] ss:$16 sps:$4 sm:$0xff]  }
  0x95   :  { %1336 = vmatpush1.bf16.msra.mxu0 %v3367_v52  ;;  %1500 = vmatpush1.bf16.msra.mxu1 %v3370_v53  ;;  %v3457_v52 = vld [vmem:[#allocation2 + $0x540] ss:$16 sps:$4 sm:$0xff]   ;;  %v3460_v53 = vld [vmem:[#allocation2 + $0x548] ss:$16 sps:$4 sm:$0xff]  }
  0x96   :  { %1337 = vmatprep.subr.bf16.mxu0 %v3375_v54  ;;  %1501 = vmatprep.subr.bf16.mxu1 %v3378_v55  ;;  %v3465_v54 = vld [vmem:[#allocation2 + $0x564] ss:$16 sps:$4 sm:$0xff]   ;;  %v3468_v55 = vld [vmem:[#allocation2 + $0x56c] ss:$16 sps:$4 sm:$0xff]  }
  0x99   :  { %1338 = vmatpush1.bf16.msra.mxu0 %v3373_v56  ;;  %1502 = vmatpush1.bf16.msra.mxu1 %v3376_v57  ;;  %v3463_v56 = vld [vmem:[#allocation2 + $0x560] ss:$16 sps:$4 sm:$0xff]   ;;  %v3466_v57 = vld [vmem:[#allocation2 + $0x568] ss:$16 sps:$4 sm:$0xff]  }
  0x9a   :  { %1339 = vmatprep.subr.bf16.mxu0 %v3381_v58  ;;  %1503 = vmatprep.subr.bf16.mxu1 %v3384_v59  ;;  %v3471_v58 = vld [vmem:[#allocation2 + $0x584] ss:$16 sps:$4 sm:$0xff]   ;;  %v3474_v59 = vld [vmem:[#allocation2 + $0x58c] ss:$16 sps:$4 sm:$0xff]  }
  0x9d   :  { %1340 = vmatpush1.bf16.msra.mxu0 %v3379_v60  ;;  %1504 = vmatpush1.bf16.msra.mxu1 %v3382_v61  ;;  %v3469_v60 = vld [vmem:[#allocation2 + $0x580] ss:$16 sps:$4 sm:$0xff]   ;;  %v3472_v61 = vld [vmem:[#allocation2 + $0x588] ss:$16 sps:$4 sm:$0xff]  }
  0x9e   :  { %1341 = vmatprep.subr.bf16.mxu0 %v3387_v62  ;;  %1505 = vmatprep.subr.bf16.mxu1 %v3390_v63  ;;  %v3477_v62 = vld [vmem:[#allocation2 + $0x5a4] ss:$16 sps:$4 sm:$0xff]   ;;  %v3480_v63 = vld [vmem:[#allocation2 + $0x5ac] ss:$16 sps:$4 sm:$0xff]  }
  0xa1   :  { %1342 = vmatpush1.bf16.msra.mxu0 %v3385_v0  ;;  %1506 = vmatpush1.bf16.msra.mxu1 %v3388_v1  ;;  %v3475_v0 = vld [vmem:[#allocation2 + $0x5a0] ss:$16 sps:$4 sm:$0xff]   ;;  %v3478_v1 = vld [vmem:[#allocation2 + $0x5a8] ss:$16 sps:$4 sm:$0xff]  }
  0xa2   :  { %1343 = vmatprep.subr.bf16.mxu0 %v3393_v2  ;;  %1507 = vmatprep.subr.bf16.mxu1 %v3396_v3  ;;  %v3483_v2 = vld [vmem:[#allocation2 + $0x5c4] ss:$16 sps:$4 sm:$0xff]   ;;  %v3486_v3 = vld [vmem:[#allocation2 + $0x5cc] ss:$16 sps:$4 sm:$0xff]  }
  0xa5   :  { %1344 = vmatpush1.bf16.msra.mxu0 %v3391_v4  ;;  %1508 = vmatpush1.bf16.msra.mxu1 %v3394_v5  ;;  %v3481_v4 = vld [vmem:[#allocation2 + $0x5c0] ss:$16 sps:$4 sm:$0xff]   ;;  %v3484_v5 = vld [vmem:[#allocation2 + $0x5c8] ss:$16 sps:$4 sm:$0xff]  }
  0xa6   :  { %1354 = vmatprep.subr.bf16.mxu0 %v3399_v6  ;;  %1518 = vmatprep.subr.bf16.mxu1 %v3402_v8  ;;  %v3489_v6 = vld [vmem:[#allocation2 + $0x5e4] ss:$16 sps:$4 sm:$0xff]   ;;  %v3487_v8 = vld [vmem:[#allocation2 + $0x5e0] ss:$16 sps:$4 sm:$0xff]  }
  0xa8   :  { %1346 = vmatmul.mubr.bf16.vlgmr.msra.gmra.mrb[0].mxu0 %v65_v10  ;;  %1510 = vmatmul.mubr.bf16.vlgmr.msra.gmra.mrb[0].mxu1 %v65_v10  ;;  %v60_v10 = vld [vmem:[%s4175_s0 + $0x20] sm:$0xff] }
  0xa9   :  { %1355 = vmatpush1.bf16.msra.mxu0 %v3397_v9  ;;  %1519 = vmatpush1.bf16.msra.mxu1 %v3400_v11  ;;  %v3490_v9 = vld [vmem:[#allocation2 + $0x5e8] ss:$16 sps:$4 sm:$0xff]   ;;  %v3495_v11 = vld [vmem:[#allocation2 + $0x604] ss:$16 sps:$4 sm:$0xff]  }
  0xaa   :  { %1356 = vmatprep.subr.bf16.mxu0 %v3405_v12  ;;  %1520 = vmatprep.subr.bf16.mxu1 %v3408_v13  ;;  %v3498_v12 = vld [vmem:[#allocation2 + $0x60c] ss:$16 sps:$4 sm:$0xff]   ;;  %v3493_v13 = vld [vmem:[#allocation2 + $0x600] ss:$16 sps:$4 sm:$0xff]  }
  0xab   :  { %1386 = vmatprep.mubr.bf16.mxu0 %v68_v15  ;;  %1550 = vmatprep.mubr.bf16.mxu1 %v68_v15  ;;  %v67_v15 = vpack.c.bf16 %v60_v10, %v60_v10 }
  0xad   :  { %1357 = vmatpush1.bf16.msra.mxu0 %v3403_v16  ;;  %1521 = vmatpush1.bf16.msra.mxu1 %v3406_v17  ;;  %v3501_v16 = vld [vmem:[%s4178_s3 + $0x4] ss:$12 sps:$4 sm:$0xff]   ;;  %v3526_v17 = vld [vmem:[%s4178_s3 + $0xc8] ss:$12 sps:$4 sm:$0xff]  }
  0xae   :  { %1358 = vmatprep.subr.bf16.mxu0 %v3411_v18  ;;  %1522 = vmatprep.subr.bf16.mxu1 %v3414_v19  ;;  %v3741_v18 = vmov 0   ;;  %v62_v19 = vld [vmem:[%s4175_s0 + $0x30] sm:$0xff]  ;;  %s3707_s0 = scalar_lea.vmem %s2735_s5, 128 }
  0xaf   :  { %p3708_p2 = scmp.ne.s32.totalorder %s2735_s5, %s3707_s0  ;;  %p3713_p4 = scmp.lt.s32.totalorder %s3707_s0, %s3707_s0 }
  0xb1   :  { %1359 = vmatpush1.bf16.msra.mxu0 %v3409_v20  ;;  %1523 = vmatpush1.bf16.msra.mxu1 %v3412_v21  ;;  %v3499_v20 = vld [vmem:[%s4178_s3] ss:$12 sps:$4 sm:$0xff]   ;;  %v3527_v21 = vld [vmem:[%s4178_s3 + $0x8] ss:$12 sps:$4 sm:$0xff]   ;;  %p3714_p5 = por %p3713_p4, %p3712_p3 }
  0xb2   :  { %1360 = vmatprep.subr.bf16.mxu0 %v3417_v22  ;;  %1524 = vmatprep.subr.bf16.mxu1 %v3420_v23  ;;  %v69_v22 = vpack.c.bf16 %v62_v19, %v62_v19  ;;  %v3504_v23 = vld [vmem:[%s4178_s3 + $0x1c] ss:$12 sps:$4 sm:$0xff]  }
  0xb3   :  { %p3715_p6 = pnand %p3714_p5, %p3708_p2 }
  0xb5   :  { %1361 = vmatpush1.bf16.msra.mxu0 %v3415_v24  ;;  %1525 = vmatpush1.bf16.msra.mxu1 %v3418_v25  ;;  %v3531_v24 = vld [vmem:[%s4178_s3 + $0xe0] ss:$12 sps:$4 sm:$0xff]   ;;  %v3502_v25 = vld [vmem:[%s4178_s3 + $0x18] ss:$12 sps:$4 sm:$0xff]  }
  0xb6   :  { %1362 = vmatprep.subr.bf16.mxu0 %v3423_v26  ;;  %1526 = vmatprep.subr.bf16.mxu1 %v3426_v27  ;;  %v3532_v26 = vld [vmem:[%s4178_s3 + $0x20] ss:$12 sps:$4 sm:$0xff]  }
  0xb7   :  { %v3507_v27 = vld [vmem:[%s4178_s3 + $0x34] ss:$12 sps:$4 sm:$0xff]  }
  0xb9   :  { %1363 = vmatpush1.bf16.msra.mxu0 %v3421_v28  ;;  %1527 = vmatpush1.bf16.msra.mxu1 %v3424_v29  ;;  %v3536_v28 = vld [vmem:[%s4178_s3 + $0xf8] ss:$12 sps:$4 sm:$0xff]   ;;  %v3505_v29 = vld [vmem:[%s4178_s3 + $0x30] ss:$12 sps:$4 sm:$0xff]  }
  0xba   :  { %1364 = vmatprep.subr.bf16.mxu0 %v3429_v30  ;;  %1528 = vmatprep.subr.bf16.mxu1 %v3432_v31  ;;  %v3537_v30 = vld [vmem:[%s4178_s3 + $0x38] ss:$12 sps:$4 sm:$0xff]  }
  0xbb   :  { %v3510_v31 = vld [vmem:[%s4178_s3 + $0x4c] ss:$12 sps:$4 sm:$0xff]  }
  0xbd   :  { %1365 = vmatpush1.bf16.msra.mxu0 %v3427_v32  ;;  %1529 = vmatpush1.bf16.msra.mxu1 %v3430_v33  ;;  %v3541_v32 = vld [vmem:[%s4178_s3 + $0x110] ss:$12 sps:$4 sm:$0xff]   ;;  %v3508_v33 = vld [vmem:[%s4178_s3 + $0x48] ss:$12 sps:$4 sm:$0xff]  }
  0xbe   :  { %1366 = vmatprep.subr.bf16.mxu0 %v3435_v34  ;;  %1530 = vmatprep.subr.bf16.mxu1 %v3438_v35  ;;  %v3542_v34 = vld [vmem:[%s4178_s3 + $0x50] ss:$12 sps:$4 sm:$0xff]  }
  0xbf   :  { %v3513_v35 = vld [vmem:[%s4178_s3 + $0x64] ss:$12 sps:$4 sm:$0xff]  }
  0xc1   :  { %1367 = vmatpush1.bf16.msra.mxu0 %v3433_v36  ;;  %1531 = vmatpush1.bf16.msra.mxu1 %v3436_v37  ;;  %v3546_v36 = vld [vmem:[%s4178_s3 + $0x128] ss:$12 sps:$4 sm:$0xff]   ;;  %v3511_v37 = vld [vmem:[%s4178_s3 + $0x60] ss:$12 sps:$4 sm:$0xff]  }
  0xc2   :  { %1368 = vmatprep.subr.bf16.mxu0 %v3441_v38  ;;  %1532 = vmatprep.subr.bf16.mxu1 %v3444_v39  ;;  %v3547_v38 = vld [vmem:[%s4178_s3 + $0x68] ss:$12 sps:$4 sm:$0xff]  }
  0xc3   :  { %v3516_v39 = vld [vmem:[%s4178_s3 + $0x7c] ss:$12 sps:$4 sm:$0xff]  }
  0xc5   :  { %1369 = vmatpush1.bf16.msra.mxu0 %v3439_v40  ;;  %1533 = vmatpush1.bf16.msra.mxu1 %v3442_v41  ;;  %v3551_v40 = vld [vmem:[%s4178_s3 + $0x140] ss:$12 sps:$4 sm:$0xff]   ;;  %v3514_v41 = vld [vmem:[%s4178_s3 + $0x78] ss:$12 sps:$4 sm:$0xff]  }
  0xc6   :  { %1370 = vmatprep.subr.bf16.mxu0 %v3447_v42  ;;  %1534 = vmatprep.subr.bf16.mxu1 %v3450_v43  ;;  %v3552_v42 = vld [vmem:[%s4178_s3 + $0x80] ss:$12 sps:$4 sm:$0xff]  }
  0xc7   :  { %v3519_v43 = vld [vmem:[%s4178_s3 + $0x94] ss:$12 sps:$4 sm:$0xff]  }
  0xc9   :  { %1371 = vmatpush1.bf16.msra.mxu0 %v3445_v44  ;;  %1535 = vmatpush1.bf16.msra.mxu1 %v3448_v45  ;;  %v3517_v44 = vld [vmem:[%s4178_s3 + $0x90] ss:$12 sps:$4 sm:$0xff]   ;;  %v3522_v45 = vld [vmem:[%s4178_s3 + $0xac] ss:$12 sps:$4 sm:$0xff]  }
  0xca   :  { %1372 = vmatprep.subr.bf16.mxu0 %v3453_v46  ;;  %1536 = vmatprep.subr.bf16.mxu1 %v3456_v47  ;;  %v3520_v46 = vld [vmem:[%s4178_s3 + $0xa8] ss:$12 sps:$4 sm:$0xff]   ;;  %v3525_v47 = vld [vmem:[%s4178_s3 + $0xc4] ss:$12 sps:$4 sm:$0xff]  }
  0xcd   :  { %1373 = vmatpush1.bf16.msra.mxu0 %v3451_v48  ;;  %1537 = vmatpush1.bf16.msra.mxu1 %v3454_v49  ;;  %v3523_v48 = vld [vmem:[%s4178_s3 + $0xc0] ss:$12 sps:$4 sm:$0xff]   ;;  %v3530_v49 = vld [vmem:[%s4178_s3 + $0xdc] ss:$12 sps:$4 sm:$0xff]  }
  0xce   :  { %1374 = vmatprep.subr.bf16.mxu0 %v3459_v50  ;;  %1538 = vmatprep.subr.bf16.mxu1 %v3462_v51  ;;  %v3528_v50 = vld [vmem:[%s4178_s3 + $0xd8] ss:$12 sps:$4 sm:$0xff]   ;;  %v3535_v51 = vld [vmem:[%s4178_s3 + $0xf4] ss:$12 sps:$4 sm:$0xff]  }
  0xd1   :  { %1375 = vmatpush1.bf16.msra.mxu0 %v3457_v52  ;;  %1539 = vmatpush1.bf16.msra.mxu1 %v3460_v53  ;;  %v3533_v52 = vld [vmem:[%s4178_s3 + $0xf0] ss:$12 sps:$4 sm:$0xff]   ;;  %v3540_v53 = vld [vmem:[%s4178_s3 + $0x10c] ss:$12 sps:$4 sm:$0xff]  }
  0xd2   :  { %1376 = vmatprep.subr.bf16.mxu0 %v3465_v54  ;;  %1540 = vmatprep.subr.bf16.mxu1 %v3468_v55  ;;  %v3538_v54 = vld [vmem:[%s4178_s3 + $0x108] ss:$12 sps:$4 sm:$0xff]   ;;  %v3545_v55 = vld [vmem:[%s4178_s3 + $0x124] ss:$12 sps:$4 sm:$0xff]  }
  0xd5   :  { %1377 = vmatpush1.bf16.msra.mxu0 %v3463_v56  ;;  %1541 = vmatpush1.bf16.msra.mxu1 %v3466_v57  ;;  %v3543_v56 = vld [vmem:[%s4178_s3 + $0x120] ss:$12 sps:$4 sm:$0xff]   ;;  %v3550_v57 = vld [vmem:[%s4178_s3 + $0x13c] ss:$12 sps:$4 sm:$0xff]  }
  0xd6   :  { %1378 = vmatprep.subr.bf16.mxu0 %v3471_v58  ;;  %1542 = vmatprep.subr.bf16.mxu1 %v3474_v59  ;;  %v3548_v58 = vld [vmem:[%s4178_s3 + $0x138] ss:$12 sps:$4 sm:$0xff]   ;;  %v3555_v59 = vld [vmem:[%s4178_s3 + $0x154] ss:$12 sps:$4 sm:$0xff]  }
  0xd9   :  { %1379 = vmatpush1.bf16.msra.mxu0 %v3469_v60  ;;  %1543 = vmatpush1.bf16.msra.mxu1 %v3472_v61  ;;  %v3556_v60 = vld [vmem:[%s4178_s3 + $0x158] ss:$12 sps:$4 sm:$0xff]   ;;  %v3553_v61 = vld [vmem:[%s4178_s3 + $0x150] ss:$12 sps:$4 sm:$0xff]  }
  0xda   :  { %1380 = vmatprep.subr.bf16.mxu0 %v3477_v62  ;;  %1544 = vmatprep.subr.bf16.mxu1 %v3480_v63  ;;  %v3557_v62 = vld [vmem:[%s4178_s3 + $0x98] ss:$12 sps:$4 sm:$0xff]  }
  0xdb   :  { %v3560_v63 = vld [vmem:[%s4178_s3 + $0x16c] ss:$12 sps:$4 sm:$0xff]  }
  0xdd   :  { %1381 = vmatpush1.bf16.msra.mxu0 %v3475_v0  ;;  %1545 = vmatpush1.bf16.msra.mxu1 %v3478_v1  ;;  %v3561_v0 = vld [vmem:[%s4178_s3 + $0x170] ss:$12 sps:$4 sm:$0xff]   ;;  %v3558_v1 = vld [vmem:[%s4178_s3 + $0x168] ss:$12 sps:$4 sm:$0xff]  }
  0xde   :  { %1382 = vmatprep.subr.bf16.mxu0 %v3483_v2  ;;  %1546 = vmatprep.subr.bf16.mxu1 %v3486_v3  ;;  %v3562_v2 = vld [vmem:[%s4178_s3 + $0xb0] ss:$12 sps:$4 sm:$0xff]  }
  0xdf   :  { %v3565_v3 = vld [vmem:[%s4178_s3 + $0x184] ss:$12 sps:$4 sm:$0xff]  }
  0xe1   :  { %1383 = vmatpush1.bf16.msra.mxu0 %v3481_v4  ;;  %1547 = vmatpush1.bf16.msra.mxu1 %v3484_v5  ;;  %v3566_v4 = vld [vmem:[%s4178_s3 + $0x248] ss:$12 sps:$4 sm:$0xff]   ;;  %v268_v5 = vlaneseq }
  0xe2   :  { %1384 = vmatprep.subr.bf16.mxu0 %v3489_v6  ;;  %1548 = vmatprep.subr.bf16.mxu1 %v3492_v7 }
  0xe3   :  { %v3980_v6 = vshrl.u32 %v268_v5, 7  ;;  %v3606_v5 = vld [vmem:[%s4178_s3 + $0x258] ss:$12 sps:$4 sm:$0xff]  }
  0xe5   :  { %1385 = vmatpush1.bf16.msra.mxu0 %v3487_v8  ;;  %1549 = vmatpush1.bf16.msra.mxu1 %v3490_v9  ;;  %v270_v7 = vsub.s32 0, %v3980_v6  ;;  %v3986_v8 = vld [vmem:[%s4177_s2] sm:$0xf]  ;;  %v274_v9 = vsub.s32 1, %v3980_v6  ;;  %v282_v10 = vsub.s32 3, %v3980_v6 }
  0xe6   :  { %1395 = vmatprep.subr.bf16.mxu0 %v3495_v11  ;;  %1559 = vmatprep.subr.bf16.mxu1 %v3498_v12 }
  0xe7   :  { %v271_v11 = vrot.slane %v3986_v8, %v270_v7  ;;  %v275_v12 = vrot.slane %v3986_v8, %v274_v9 }
  0xe8   :  { %1387 = vmatmul.mubr.bf16.vlgmr.msra.gmra.mrb[0].mxu0 %v67_v15  ;;  %1551 = vmatmul.mubr.bf16.vlgmr.msra.gmra.mrb[0].mxu1 %v67_v15 }
  0xe9   :  { %1396 = vmatpush1.bf16.msra.mxu0 %v3493_v13  ;;  %1560 = vmatpush1.bf16.msra.mxu1 %v3496_v14  ;;  %v283_v13 = vrot.slane %v3986_v8, %v282_v10  ;;  %v3609_v10 = vld [vmem:[%s4178_s3 + $0x270] ss:$12 sps:$4 sm:$0xff]  }
  0xea   :  { %1427 = vmatprep.mubr.bf16.mxu0 %v3741_v18  ;;  %1591 = vmatprep.mubr.bf16.mxu1 %v3741_v18 }
  0xeb   :  { %2265 = vmatprep.subr.bf16.mxu0 %v3501_v16  ;;  %3066 = vmatprep.subr.bf16.mxu1 %v3526_v17 }
  0xf4   :  { %2940 = vmatmul.mubr.msk.bf16.vlgmr.msra.gmra.mrb[0].mxu0 %vm1268_vm0, %v69_v22  ;;  %2941 = vmatmul.mubr.msk.bf16.vlgmr.msra.gmra.mrb[0].mxu1 %vm1268_vm0, %v69_v22 }
  0xf5   :  { %2266 = vmatpush1.bf16.msra.mxu0 %v3499_v20  ;;  %3067 = vmatpush3.bf16.msra.mxu1 %v3527_v21 }
  0xf6   :  { %2267 = vmatprep.subr.bf16.mxu0 %v3504_v23  ;;  %3068 = vmatprep.subr.bf16.mxu1 %v3531_v24 }
  0xf9   :  { %2268 = vmatpush1.bf16.msra.mxu0 %v3502_v25  ;;  %3069 = vmatpush3.bf16.msra.mxu1 %v3532_v26 }
  0xfa   :  { %2269 = vmatprep.subr.bf16.mxu0 %v3507_v27  ;;  %3070 = vmatprep.subr.bf16.mxu1 %v3536_v28 }
  0xfd   :  { %2270 = vmatpush1.bf16.msra.mxu0 %v3505_v29  ;;  %3071 = vmatpush3.bf16.msra.mxu1 %v3537_v30  ;;  %v3563_v29 = vld [vmem:[%s4178_s3 + $0x180] ss:$12 sps:$4 sm:$0xff]   ;;  %v3567_v30 = vld [vmem:[%s4178_s3 + $0x188] ss:$12 sps:$4 sm:$0xff]  }
  0xfe   :  { %2271 = vmatprep.subr.bf16.mxu0 %v3510_v31  ;;  %3072 = vmatprep.subr.bf16.mxu1 %v3541_v32  ;;  %v3570_v32 = vld [vmem:[%s4178_s3 + $0x19c] ss:$12 sps:$4 sm:$0xff]  }
 0x101   :  { %2272 = vmatpush1.bf16.msra.mxu0 %v3508_v33  ;;  %3073 = vmatpush3.bf16.msra.mxu1 %v3542_v34  ;;  %v3571_v33 = vld [vmem:[%s4178_s3 + $0x260] ss:$12 sps:$4 sm:$0xff]  }
 0x102   :  { %2273 = vmatprep.subr.bf16.mxu0 %v3513_v35  ;;  %3074 = vmatprep.subr.bf16.mxu1 %v3546_v36  ;;  %v3568_v35 = vld [vmem:[%s4178_s3 + $0x198] ss:$12 sps:$4 sm:$0xff]   ;;  %v3572_v36 = vld [vmem:[%s4178_s3 + $0x1a0] ss:$12 sps:$4 sm:$0xff]  }
 0x105   :  { %2274 = vmatpush1.bf16.msra.mxu0 %v3511_v37  ;;  %3075 = vmatpush3.bf16.msra.mxu1 %v3547_v38  ;;  %v3575_v37 = vld [vmem:[%s4178_s3 + $0x1b4] ss:$12 sps:$4 sm:$0xff]   ;;  %v3576_v38 = vld [vmem:[%s4178_s3 + $0x278] ss:$12 sps:$4 sm:$0xff]  }
 0x106   :  { %2275 = vmatprep.subr.bf16.mxu0 %v3516_v39  ;;  %3076 = vmatprep.subr.bf16.mxu1 %v3551_v40  ;;  %v3573_v39 = vld [vmem:[%s4178_s3 + $0x1b0] ss:$12 sps:$4 sm:$0xff]   ;;  %v3577_v40 = vld [vmem:[%s4178_s3 + $0x1b8] ss:$12 sps:$4 sm:$0xff]  }
 0x109   :  { %2276 = vmatpush1.bf16.msra.mxu0 %v3514_v41  ;;  %3077 = vmatpush3.bf16.msra.mxu1 %v3552_v42  ;;  %v3580_v41 = vld [vmem:[%s4178_s3 + $0x1cc] ss:$12 sps:$4 sm:$0xff]   ;;  %v3581_v42 = vld [vmem:[%s4178_s3 + $0x290] ss:$12 sps:$4 sm:$0xff]  }
 0x10a   :  { %2277 = vmatprep.subr.bf16.mxu0 %v3519_v43  ;;  %3078 = vmatprep.subr.bf16.mxu1 %v3556_v60  ;;  %v3578_v43 = vld [vmem:[%s4178_s3 + $0x1c8] ss:$12 sps:$4 sm:$0xff]   ;;  %v3600_v60 = vld [vmem:[%s4178_s3 + $0x22c] ss:$12 sps:$4 sm:$0xff]  }
 0x10d   :  { %2278 = vmatpush1.bf16.msra.mxu0 %v3517_v44  ;;  %3079 = vmatpush3.bf16.msra.mxu1 %v3557_v62  ;;  %v3582_v44 = vld [vmem:[%s4178_s3 + $0x1d0] ss:$12 sps:$4 sm:$0xff]   ;;  %v3598_v62 = vld [vmem:[%s4178_s3 + $0x228] ss:$12 sps:$4 sm:$0xff]  }
 0x10e   :  { %2279 = vmatprep.subr.bf16.mxu0 %v3522_v45  ;;  %3080 = vmatprep.subr.bf16.mxu1 %v3561_v0  ;;  %v3585_v45 = vld [vmem:[%s4178_s3 + $0x1e4] ss:$12 sps:$4 sm:$0xff]  }
 0x111   :  { %2280 = vmatpush1.bf16.msra.mxu0 %v3520_v46  ;;  %3081 = vmatpush3.bf16.msra.mxu1 %v3562_v2  ;;  %v3586_v46 = vld [vmem:[%s4178_s3 + $0x2a8] ss:$12 sps:$4 sm:$0xff]   ;;  %v3603_v2 = vld [vmem:[%s4178_s3 + $0x240] ss:$12 sps:$4 sm:$0xff]  }
 0x112   :  { %2281 = vmatprep.subr.bf16.mxu0 %v3525_v47  ;;  %3088 = vmatprep.subr.bf16.mxu1 %v3566_v4  ;;  %v3583_v47 = vld [vmem:[%s4178_s3 + $0x1e0] ss:$12 sps:$4 sm:$0xff]   ;;  %v3608_v4 = vld [vmem:[%s4178_s3 + $0x25c] ss:$12 sps:$4 sm:$0xff]  }
 0x115   :  { %2282 = vmatpush1.bf16.msra.mxu0 %v3523_v48  ;;  %v3587_v48 = vld [vmem:[%s4178_s3 + $0x1e8] ss:$12 sps:$4 sm:$0xff]  }
 0x116   :  { %2283 = vmatprep.subr.bf16.mxu0 %v3530_v49  ;;  %v278_v49 = vsub.s32 2, %v3980_v6 }
 0x119   :  { %2284 = vmatpush1.bf16.msra.mxu0 %v3528_v50  ;;  %v3590_v50 = vld [vmem:[%s4178_s3 + $0x1fc] ss:$12 sps:$4 sm:$0xff]  }
 0x11a   :  { %2285 = vmatprep.subr.bf16.mxu0 %v3535_v51  ;;  %v3591_v51 = vld [vmem:[%s4178_s3 + $0x2c0] ss:$12 sps:$4 sm:$0xff]  }
 0x11d   :  { %2286 = vmatpush1.bf16.msra.mxu0 %v3533_v52  ;;  %v3588_v52 = vld [vmem:[%s4178_s3 + $0x1f8] ss:$12 sps:$4 sm:$0xff]  }
 0x11e   :  { %2287 = vmatprep.subr.bf16.mxu0 %v3540_v53  ;;  %v3592_v53 = vld [vmem:[%s4178_s3 + $0x200] ss:$12 sps:$4 sm:$0xff]  }
 0x121   :  { %2288 = vmatpush1.bf16.msra.mxu0 %v3538_v54  ;;  %v279_v54 = vrot.slane %v3986_v8, %v278_v49  ;;  %v3611_v8 = vld [vmem:[%s4178_s3 + $0x274] ss:$12 sps:$4 sm:$0xff]  }
 0x122   :  { %2289 = vmatprep.subr.bf16.mxu0 %v3545_v55  ;;  %v3595_v55 = vld [vmem:[%s4178_s3 + $0x214] ss:$12 sps:$4 sm:$0xff]  }
 0x125   :  { %2290 = vmatpush1.bf16.msra.mxu0 %v3543_v56  ;;  %v3596_v56 = vld [vmem:[%s4178_s3 + $0x2d8] ss:$12 sps:$4 sm:$0xff]  }
 0x126   :  { %2291 = vmatprep.subr.bf16.mxu0 %v3550_v57  ;;  %v3593_v57 = vld [vmem:[%s4178_s3 + $0x210] ss:$12 sps:$4 sm:$0xff]  }
 0x129   :  { %2292 = vmatpush1.bf16.msra.mxu0 %v3548_v58  ;;  %v3597_v58 = vld [vmem:[%s4178_s3 + $0x218] ss:$12 sps:$4 sm:$0xff]  }
 0x12a   :  { %2293 = vmatprep.subr.bf16.mxu0 %v3555_v59 }
 0x12d   :  { %2294 = vmatpush1.bf16.msra.mxu0 %v3553_v61  ;;  %v3601_v61 = vld [vmem:[%s4178_s3 + $0x2f0] ss:$12 sps:$4 sm:$0xff]  }
 0x12e   :  { %2295 = vmatprep.subr.bf16.mxu0 %v3560_v63  ;;  %v3602_v63 = vld [vmem:[%s4178_s3 + $0x230] ss:$12 sps:$4 sm:$0xff]  }
 0x131   :  { %2296 = vmatpush1.bf16.msra.mxu0 %v3558_v1  ;;  %v3605_v1 = vld [vmem:[%s4178_s3 + $0x244] ss:$12 sps:$4 sm:$0xff]  }
 0x132   :  { %2306 = vmatprep.subr.bf16.mxu0 %v3565_v3 }
 0x1c7   :  { %v1429_v14 = vpop.f32.mrb[0].mxu0  ;;  %v3997_v15 = vpop.f32.mrb[0].mxu1 }
 0x1c8   :  { %v3161_v16 = vadd.f32 %v1429_v14, %v271_v11  ;;  %v1431_v17 = vpop.f32.mrb[1].mxu0  ;;  %v1595_v18 = vpop.f32.mrb[1].mxu1  ;;  %v3163_v59 = vadd.f32 %v3997_v15, %v279_v54  ;;  %v3614_v11 = vld [vmem:[%s4178_s3 + $0x28c] ss:$12 sps:$4 sm:$0xff]   ;;  %v3620_v15 = vld [vmem:[%s4178_s3 + $0x2bc] ss:$12 sps:$4 sm:$0xff]  }
 0x1c9   :  { %v3162_v19 = vadd.f32 %v1431_v17, %v275_v12  ;;  %v3164_v20 = vadd.f32 %v1595_v18, %v283_v13  ;;  %v1433_v21 = vpop.f32.mrb[2].mxu0  ;;  %v1597_v22 = vpop.f32.mrb[2].mxu1  ;;  %v3612_v12 = vld [vmem:[%s4178_s3 + $0x288] ss:$12 sps:$4 sm:$0xff]   ;;  %v3617_v13 = vld [vmem:[%s4178_s3 + $0x2a4] ss:$12 sps:$4 sm:$0xff]  }
 0x1ca   :  { %v1600_v23 = vmax.f32 %v3161_v16, 0.0  ;;  %v1434_v24 = vpop.f32.mrb[3].mxu0  ;;  %v1598_v25 = vpop.f32.mrb[3].mxu1  ;;  %v1602_v0 = vmax.f32 %v3163_v59, 0.0  ;;  %v3615_v14 = vld [vmem:[%s4178_s3 + $0x2a0] ss:$12 sps:$4 sm:$0xff]  }
 0x1cb   :  { %v1601_v26 = vmax.f32 %v3162_v19, 0.0  ;;  %v1603_v27 = vmax.f32 %v3164_v20, 0.0  ;;  %v3618_v16 = vld [vmem:[%s4178_s3 + $0x2b8] ss:$12 sps:$4 sm:$0xff]   ;;  %v3623_v17 = vld [vmem:[%s4178_s3 + $0x2d4] ss:$12 sps:$4 sm:$0xff]  }
 0x1cc   :  { %v1604_v31 = vpack.c.bf16 %v1600_v23, %v1600_v23  ;;  %v1606_v3 = vpack.c.bf16 %v1602_v0, %v1602_v0  ;;  %v3621_v18 = vld [vmem:[%s4178_s3 + $0x2d0] ss:$12 sps:$4 sm:$0xff]   ;;  %v3626_v19 = vld [vmem:[%s4178_s3 + $0x2ec] ss:$12 sps:$4 sm:$0xff]   ;;  %v3624_v20 = vld [vmem:[%s4178_s3 + $0x2e8] ss:$12 sps:$4 sm:$0xff]  }
 0x1cd   :  { %v1605_v28 = vpack.c.bf16 %v1601_v26, %v1601_v26  ;;  %v1607_v34 = vpack.c.bf16 %v1603_v27, %v1603_v27  ;;  %v3627_v21 = vld [vmem:[#allocation5 + $0x40] sm:$0xff]   ;;  %v3629_v23 = vld [vmem:[#allocation5 + $0x48] sm:$0xff]   ;;  %v3631_v25 = vld [vmem:[#allocation5 + $0x50] sm:$0xff]  }
 0x1ce   :  { %v3628_v22 = vld [vmem:[#allocation5] sm:$0xff]   ;;  %v3630_v24 = vld [vmem:[#allocation5 + $0x8] sm:$0xff]   ;;  %v3632_v26 = vld [vmem:[#allocation5 + $0x10] sm:$0xff]  }
 0x1cf   :  { %2297 = vmatprep.mubr.bf16.mxu0 %v1605_v28  ;;  %2379 = vmatprep.mubr.bf16.mxu1 %v1605_v28  ;;  %v3633_v27 = vld [vmem:[#allocation5 + $0x58] sm:$0xff]  }
 0x1d0   :  { %2298 = vmatmul.mubr.bf16.vlgmr.msra.gmra.mrb[4].mxu0 %v1604_v31  ;;  %2380 = vmatmul.mubr.bf16.vlgmr.msra.gmra.mrb[4].mxu1 %v1604_v31  ;;  %v3634_v28 = vld [vmem:[#allocation5 + $0x18] sm:$0xff]   ;;  %v3637_v31 = vld [vmem:[#allocation5 + $0x68] sm:$0xff]  }
 0x1d1   :  { %2307 = vmatpush1.bf16.msra.mxu0 %v3563_v29  ;;  %3089 = vmatpush3.bf16.msra.mxu1 %v3567_v30  ;;  %v3635_v29 = vld [vmem:[#allocation5 + $0x60] sm:$0xff]  }
 0x1d2   :  { %2338 = vmatprep.mubr.bf16.mxu0 %v1607_v34  ;;  %2419 = vmatprep.mubr.bf16.mxu1 %v1607_v34  ;;  %v3636_v30 = vld [vmem:[#allocation5 + $0x20] sm:$0xff]   ;;  %v3640_v34 = vld [vmem:[#allocation5 + $0x30] sm:$0xff]  }
 0x1d3   :  { %2308 = vmatprep.subr.bf16.mxu0 %v3570_v32  ;;  %3090 = vmatprep.subr.bf16.mxu1 %v3571_v33  ;;  %v3638_v32 = vld [vmem:[#allocation5 + $0x28] sm:$0xff]   ;;  %v3639_v33 = vld [vmem:[#allocation5 + $0x70] sm:$0xff]  }
 0x1d5   :  { %2309 = vmatpush1.bf16.msra.mxu0 %v3568_v35  ;;  %3091 = vmatpush3.bf16.msra.mxu1 %v3572_v36  ;;  %v3641_v35 = vld [vmem:[#allocation5 + $0x78] sm:$0xff]  }
 0x1d6   :  { %2310 = vmatprep.subr.bf16.mxu0 %v3575_v37  ;;  %3092 = vmatprep.subr.bf16.mxu1 %v3576_v38  ;;  %v3642_v36 = vld [vmem:[#allocation5 + $0x38] sm:$0xff]   ;;  %v3742_v37 = vmov 0.0  }
 0x1d9   :  { %2311 = vmatpush1.bf16.msra.mxu0 %v3573_v39  ;;  %3093 = vmatpush3.bf16.msra.mxu1 %v3577_v40 }
 0x1da   :  { %2312 = vmatprep.subr.bf16.mxu0 %v3580_v41  ;;  %3094 = vmatprep.subr.bf16.mxu1 %v3581_v42 }
 0x1dd   :  { %2313 = vmatpush1.bf16.msra.mxu0 %v3578_v43  ;;  %3095 = vmatpush3.bf16.msra.mxu1 %v3582_v44  ;;  %v1736_v43 = vld [vmem:[%s4179_s4] sm:$0x7] }
 0x1de   :  { %2314 = vmatprep.subr.bf16.mxu0 %v3585_v45  ;;  %3096 = vmatprep.subr.bf16.mxu1 %v3586_v46  ;;  %v1749_v44 = vrot.slane %v1736_v43, %v278_v49  ;;  %v1745_v54 = vrot.slane %v1736_v43, %v274_v9 }
 0x1e1   :  { %2315 = vmatpush1.bf16.msra.mxu0 %v3583_v47  ;;  %3097 = vmatpush3.bf16.msra.mxu1 %v3587_v48 }
 0x1e2   :  { %2316 = vmatprep.subr.bf16.mxu0 %v3590_v50  ;;  %3098 = vmatprep.subr.bf16.mxu1 %v3591_v51 }
 0x1e5   :  { %2317 = vmatpush1.bf16.msra.mxu0 %v3588_v52  ;;  %3099 = vmatpush3.bf16.msra.mxu1 %v3592_v53  ;;  %v1741_v53 = vrot.slane %v1736_v43, %v270_v7 }
 0x1e6   :  { %2318 = vmatprep.subr.bf16.mxu0 %v3595_v55  ;;  %3100 = vmatprep.subr.bf16.mxu1 %v3596_v56 }
 0x1e9   :  { %2319 = vmatpush1.bf16.msra.mxu0 %v3593_v57  ;;  %3101 = vmatpush3.bf16.msra.mxu1 %v3597_v58 }
 0x1ea   :  { %2320 = vmatprep.subr.bf16.mxu0 %v3600_v60  ;;  %3102 = vmatprep.subr.bf16.mxu1 %v3601_v61 }
 0x1ed   :  { %2321 = vmatpush1.bf16.msra.mxu0 %v3598_v62  ;;  %3103 = vmatpush3.bf16.msra.mxu1 %v3602_v63 }
 0x1ee   :  { %2322 = vmatprep.subr.bf16.mxu0 %v3605_v1  ;;  %3110 = vmatprep.subr.bf16.mxu1 %v3627_v21 }
 0x1f0   :  { %2420 = vmatmul.mubr.bf16.vlgmr.msra.gmra.mrb[8].mxu1 %v1606_v3 }
 0x1f1   :  { %2323 = vmatpush1.bf16.msra.mxu0 %v3603_v2  ;;  %3111 = vmatpush3.bf16.msra.mxu1 %v3628_v22 }
 0x1f2   :  { %2324 = vmatprep.subr.bf16.mxu0 %v3608_v4  ;;  %3112 = vmatprep.subr.bf16.mxu1 %v3629_v23 }
 0x1f5   :  { %2325 = vmatpush1.bf16.msra.mxu0 %v3606_v5  ;;  %3113 = vmatpush3.bf16.msra.mxu1 %v3630_v24  ;;  %v3644_v5 = vld [vmem:[#allocation5 + $0x88] sm:$0xff]   ;;  %v3041_v24 = vld [vmem:[%s4181_s6] ss:$0 sm:$0xff] }
 0x1f6   :  { %2326 = vmatprep.subr.bf16.mxu0 %v3611_v8  ;;  %3114 = vmatprep.subr.bf16.mxu1 %v3631_v25  ;;  %v3645_v8 = vld [vmem:[#allocation5 + $0x90] sm:$0xff]  }
 0x1f9   :  { %2327 = vmatpush1.bf16.msra.mxu0 %v3609_v10  ;;  %3115 = vmatpush3.bf16.msra.mxu1 %v3632_v26  ;;  %v3646_v10 = vld [vmem:[#allocation5 + $0x98] sm:$0xff]  }
 0x1fa   :  { %2328 = vmatprep.subr.bf16.mxu0 %v3614_v11  ;;  %3116 = vmatprep.subr.bf16.mxu1 %v3633_v27 }
 0x1fd   :  { %2329 = vmatpush1.bf16.msra.mxu0 %v3612_v12  ;;  %3117 = vmatpush3.bf16.msra.mxu1 %v3634_v28 }
 0x1fe   :  { %2330 = vmatprep.subr.bf16.mxu0 %v3617_v13  ;;  %3118 = vmatprep.subr.bf16.mxu1 %v3635_v29  ;;  %v3647_v13 = vld [vmem:[#allocation5 + $0xa0] sm:$0xff]  }
 0x201   :  { %2331 = vmatpush1.bf16.msra.mxu0 %v3615_v14  ;;  %3119 = vmatpush3.bf16.msra.mxu1 %v3636_v30  ;;  %v3648_v14 = vld [vmem:[#allocation5 + $0xa8] sm:$0xff]  }
 0x202   :  { %2332 = vmatprep.subr.bf16.mxu0 %v3620_v15  ;;  %3120 = vmatprep.subr.bf16.mxu1 %v3637_v31  ;;  %v3649_v15 = vld [vmem:[#allocation5 + $0xb0] sm:$0xff]  }
 0x205   :  { %2333 = vmatpush1.bf16.msra.mxu0 %v3618_v16  ;;  %3121 = vmatpush3.bf16.msra.mxu1 %v3638_v32  ;;  %v3650_v16 = vld [vmem:[#allocation5 + $0xb8] sm:$0xff]  }
 0x206   :  { %2334 = vmatprep.subr.bf16.mxu0 %v3623_v17  ;;  %3122 = vmatprep.subr.bf16.mxu1 %v3639_v33 }
 0x209   :  { %2335 = vmatpush1.bf16.msra.mxu0 %v3621_v18  ;;  %3123 = vmatpush3.bf16.msra.mxu1 %v3640_v34 }
 0x20a   :  { %2336 = vmatprep.subr.bf16.mxu0 %v3626_v19  ;;  %3124 = vmatprep.subr.bf16.mxu1 %v3641_v35 }
 0x20d   :  { %2337 = vmatpush1.bf16.msra.mxu0 %v3624_v20  ;;  %3125 = vmatpush3.bf16.msra.mxu1 %v3642_v36 }
 0x20e   :  { %3141 = vmatprep.subr.bf16.mxu1 %v3742_v37 }
 0x210   :  { %2339 = vmatmul.mubr.bf16.vlgmr.msra.gmra.mrb[4].mxu0 %v1606_v3  ;;  %v3643_v3 = vld [vmem:[#allocation5 + $0x80] sm:$0xff]  }
 0x2a3   :  { %v3082_v38 = vpop.f32.mrb[4].mxu1 }
 0x2a4   :  { %v3083_v39 = vpop.f32.mrb[5].mxu1 }
 0x2a5   :  { %v3084_v40 = vadd.f32 %v3083_v39, %v3082_v38  ;;  %v3085_v41 = vpop.f32.mrb[6].mxu1 }
 0x2a6   :  { %v3086_v42 = vpop.f32.mrb[7].mxu1 }
 0x2a7   :  { %v2382_v47 = vadd.f32 %v3084_v40, %v1749_v44 }
 0x2c3   :  { %v3104_v45 = vpop.f32.mrb[8].mxu1 }
 0x2c4   :  { %v3105_v46 = vpop.f32.mrb[9].mxu1 }
 0x2c5   :  { %v3106_v48 = vadd.f32 %v3105_v46, %v3104_v45  ;;  %v3107_v50 = vpop.f32.mrb[10].mxu1 }
 0x2c6   :  { %v3108_v51 = vpop.f32.mrb[11].mxu1 }
 0x2c7   :  { %v2422_v52 = vadd.f32 %v3106_v48, %v2382_v47 }
 0x2c9   :  { %v3040_v6 = vmul.f32 -1.442695, %v2422_v52 }
 0x2e3   :  { %v2340_v55 = vpop.f32.mrb[4].mxu0 }
 0x2e4   :  { %v3165_v56 = vadd.f32 %v2340_v55, %v1741_v53  ;;  %v2342_v57 = vpop.f32.mrb[5].mxu0 }
 0x2e5   :  { %v3166_v58 = vadd.f32 %v2342_v57, %v1745_v54  ;;  %v2344_v59 = vpop.f32.mrb[6].mxu0 }
 0x2e6   :  { %v3038_v60 = vmul.f32 -1.442695, %v3165_v56  ;;  %v2345_v49 = vpop.f32.mrb[7].mxu0 }
 0x2e7   :  { %v3039_v61 = vmul.f32 -1.442695, %v3166_v58 }
 0x2e8   :  { %3651 = vpow2.f32 %v3038_v60 }
 0x2e9   :  { %3653 = vpow2.f32 %v3039_v61 }
 0x2f2   :  { %v3652_v62 = vpop.eup %3651 }
 0x2f3   :  { %v3654_v63 = vpop.eup %3653  ;;  %v2436_v0 = vadd.f32 1.0, %v3652_v62 }
 0x2f4   :  { %v2437_v1 = vadd.f32 1.0, %v3654_v63 }
 0x2f5   :  { %3655 = vrcp.f32 %v2436_v0 }
 0x2f6   :  { %3657 = vrcp.f32 %v2437_v1 }
 0x2f7   :  { %3659 = vpow2.f32 %v3040_v6 }
 0x2ff   :  { %v3656_v7 = vpop.eup %3655 }
 0x300   :  { %v3658_v2 = vpop.eup %3657  ;;  %v2445_v4 = vpack.c.bf16 %v3656_v7, %v3656_v7 }
 0x301   :  { %v2446_v9 = vpack.c.bf16 %v3658_v2, %v3658_v2  ;;  %v3660_v11 = vpop.eup %3659 }
 0x302   :  { %v2438_v12 = vadd.f32 1.0, %v3660_v11 }
 0x303   :  { %2679 = vmatprep.mubr.bf16.mxu1 %v2446_v9 }
 0x304   :  { %2680 = vmatmul.mubr.bf16.vlgmr.msra.gmra.mrb[12].mxu1 %v2445_v4  ;;  %3661 = vrcp.f32 %v2438_v12 }
 0x305   :  { %3142 = vmatpush3.bf16.msra.mxu1 %v3643_v3  ;;  %3157 = vmatprep.mubr.msk.bf16.mxu1 %vm3743_vm1, %v3742_v37 }
 0x306   :  { %3143 = vmatprep.subr.bf16.mxu1 %v3742_v37 }
 0x309   :  { %3144 = vmatpush3.bf16.msra.mxu1 %v3644_v5 }
 0x30a   :  { %3145 = vmatprep.subr.bf16.mxu1 %v3742_v37 }
 0x30d   :  { %3146 = vmatpush3.bf16.msra.mxu1 %v3645_v8 }
 0x30e   :  { %3147 = vmatprep.subr.bf16.mxu1 %v3742_v37  ;;  %v3662_v17 = vpop.eup %3661 }
 0x30f   :  { %v2447_v18 = vpack.c.bf16 %v3662_v17, %v3662_v17 }
 0x311   :  { %3148 = vmatpush3.bf16.msra.mxu1 %v3646_v10 }
 0x312   :  { %3149 = vmatprep.subr.bf16.mxu1 %v3742_v37 }
 0x315   :  { %3150 = vmatpush3.bf16.msra.mxu1 %v3647_v13 }
 0x316   :  { %3151 = vmatprep.subr.bf16.mxu1 %v3742_v37 }
 0x319   :  { %3152 = vmatpush3.bf16.msra.mxu1 %v3648_v14 }
 0x31a   :  { %3153 = vmatprep.subr.bf16.mxu1 %v3742_v37 }
 0x31d   :  { %3154 = vmatpush3.bf16.msra.mxu1 %v3649_v15 }
 0x31e   :  { %3155 = vmatprep.subr.bf16.mxu1 %v3742_v37 }
 0x321   :  { %3156 = vmatpush3.bf16.msra.mxu1 %v3650_v16 }
 0x324   :  { %3158 = vmatmul.mubr.bf16.vlgmr.msra.gmra.mrb[16].mxu1 %v2447_v18 }
 0x3d7   :  { %v3126_v19 = vpop.f32.mrb[12].mxu1 }
 0x3d8   :  { %v3127_v20 = vpop.f32.mrb[13].mxu1 }
 0x3d9   :  { %v3128_v21 = vadd.f32 %v3127_v20, %v3126_v19  ;;  %v3129_v22 = vpop.f32.mrb[14].mxu1 }
 0x3da   :  { %v3130_v23 = vpop.f32.mrb[15].mxu1 }
 0x3db   :  { %v2682_v25 = vadd.f32 %v3128_v21, %v3041_v24 }
 0x3f7   :  { %v2721_v26 = vpop.f32.mrb[16].mxu1 }
 0x3f8   :  { %v2722_v27 = vadd.f32 %v2721_v26, %v2682_v25  ;;  %v3159_v28 = vpop.f32.mrb[17].mxu1 }
 0x3f9   :  { %v2724_v29 = vpop.f32.mrb[18].mxu1 }
 0x3fa   :  { %2727 = vst [vmem:[#allocation7] sm:$0xff] %v2722_v27  ;;  %v3160_v30 = vpop.f32.mrb[19].mxu1 }
 0x3fb   :  { %3718 = shalt.err (!%p3715_p6)
}
 0x3fc   :  { %s3719_s6 = scalar_lea.hbm %s4182_s7, 128 }
 0x3fd   :  { %p3720_p7 = scmp.ne.s32.totalorder %s4182_s7, %s3719_s6  ;;  %p3723_p8 = scmp.lt.u32.totalorder %s3719_s6, %s4182_s7 }
 0x3ff   :  { %p3725_p9 = pnand %p3723_p8, %p3720_p7 }
 0x401   :  { %3728 = shalt.err (!%p3725_p9)
}
 0x402   :  { %2737 = dma.vmem_to_hbm [thread:$0]  %s2735_s5, 128, %s4182_s7, [#allocation4]  }
 0x403   :  { %3733 = dma.done.wait [#allocation4], 128  }
 0x404   :  { %3734 = vsyncadd [#allocation4], 4294967168 }
 0x405   :  { %2741 = vsyncpa [#allocation3], 1 }
 0x406   :  { %2742 = vsyncpa [#allocation6], 1 }
 0x407   :  { %2743 = vsyncpa [#allocation4], 1 }

</bundles_post_ra>
